<compile_context>
chip_gen: v6e
topology: v6e:2x2x1
jax: 0.10.0
libtpu: 0.0.40
codegen_flags: <defaults>
</compile_context>

<pallas_src>
import jax
import jax.numpy as jnp
from jax.experimental import pallas as pl
from jax.experimental.pallas import tpu as pltpu


def mlp_softmax_kernel(x_ref, w1_ref, b1_ref, w11_ref, b11_ref,
                       w12_ref, b12_ref, w2_ref, b2_ref, o_ref):
    # Cast x to bf16 in-kernel (cheap VPU work, hidden under the pipeline).
    x = x_ref[...].astype(jnp.bfloat16)
    # Layer 1: linear (bf16 operands, f32 accumulate) -> (dropout = id) -> relu
    h = jnp.dot(x, w1_ref[...], preferred_element_type=jnp.float32)
    h = jnp.maximum(h + b1_ref[...], 0.0)
    # Layer 1_1
    h = jnp.dot(h.astype(w11_ref.dtype), w11_ref[...],
                preferred_element_type=jnp.float32)
    h = jnp.maximum(h + b11_ref[...], 0.0)
    # Layer 1_2
    h = jnp.dot(h.astype(w12_ref.dtype), w12_ref[...],
                preferred_element_type=jnp.float32)
    h = jnp.maximum(h + b12_ref[...], 0.0)
    # Layer 2 (no relu).  Padded output columns have zero weights and a huge
    # negative bias, so after softmax they are exactly 0.
    logits = jnp.dot(h.astype(w2_ref.dtype), w2_ref[...],
                     preferred_element_type=jnp.float32)
    logits = logits + b2_ref[...]
    # Softmax over dim=1 (feature axis), all in f32.
    m = jnp.max(logits, axis=1, keepdims=True)
    e = jnp.exp(logits - m)
    denom = jnp.sum(e, axis=1, keepdims=True)
    o_ref[...] = (e * pl.reciprocal(denom, approx=True)).astype(o_ref.dtype)


def _round_up(x, m):
    return (x + m - 1) // m * m


def prepare_params(params):
    """One-time parameter prep (hoisted out of the per-call forward):
    pad D_out up to a lane-dense multiple of 128 (zero weight columns, -1e30
    bias columns so padded softmax entries are exactly 0) and cast weight
    matrices to bf16 for the MXU.  Biases stay f32 (f32 accumulation)."""
    (w1, b1, w11, b11, w12, b12, w2, b2) = params
    d_out = w2.shape[1]
    d_out_p = _round_up(d_out, 128)
    pad_c = d_out_p - d_out
    w2_p = jnp.pad(w2, ((0, 0), (0, pad_c)))
    b2_p = jnp.pad(b2, ((0, 0), (0, pad_c)), constant_values=-1e30)
    prepped = (
        w1.astype(jnp.bfloat16), b1,
        w11.astype(jnp.bfloat16), b11,
        w12.astype(jnp.bfloat16), b12,
        w2_p.astype(jnp.bfloat16), b2_p,
    )
    return prepped, d_out, d_out_p


def two_layer_net_forward(x, prepped, d_out, d_out_p, *, tile_n=256):
    """x: [N, D_in] f32.  prepped: output of prepare_params (bf16 weights,
    f32 biases, D_out padded to d_out_p lanes).  Returns [N, d_out] f32."""
    (w1_b, b1, w11_b, b11, w12_b, b12, w2_b, b2_p) = prepped
    N, D_in = x.shape
    H = w1_b.shape[1]

    # Ragged last row-tile (if N % tile_n != 0) is handled by Pallas partial
    # blocks: reads are padded, writebacks masked; rows are independent so the
    # padded-row garbage never escapes.  No wrapper-side pad/slice of rows.
    grid = (pl.cdiv(N, tile_n),)
    const = lambda i: (0, 0)  # weights/biases: same block every step -> resident

    out = pl.pallas_call(
        mlp_softmax_kernel,
        out_shape=jax.ShapeDtypeStruct((N, d_out_p), jnp.float32),
        grid_spec=pltpu.PrefetchScalarGridSpec(
            num_scalar_prefetch=0,
            grid=grid,
            in_specs=[
                pl.BlockSpec((tile_n, D_in), lambda i: (i, 0)),
                pl.BlockSpec((D_in, H), const), pl.BlockSpec((1, H), const),
                pl.BlockSpec((H, H), const),    pl.BlockSpec((1, H), const),
                pl.BlockSpec((H, H), const),    pl.BlockSpec((1, H), const),
                pl.BlockSpec((H, d_out_p), const),
                pl.BlockSpec((1, d_out_p), const),
            ],
            out_specs=pl.BlockSpec((tile_n, d_out_p), lambda i: (i, 0)),
        ),
        compiler_params=pltpu.CompilerParams(
            dimension_semantics=("parallel",)),   # megacore sharding on v7x
    )(x, w1_b, b1, w11_b, b11, w12_b, b12, w2_b, b2_p)

    # Column slice back to the true D_out.  (If the consumer can read the
    # padded slab directly, drop this slice to save one strided HBM copy.)
    return out[:, :d_out]


def init_linear_params(key, fan_in, fan_out):
    # Mirror torch.nn.Linear default init: U(-1/sqrt(fan_in), 1/sqrt(fan_in)).
    # Weight kept as (fan_in, fan_out) so the kernel can do x @ W directly.
    kw, kb = jax.random.split(key)
    bound = 1.0 / jnp.sqrt(jnp.float32(fan_in))
    w = jax.random.uniform(kw, (fan_in, fan_out), jnp.float32, -bound, bound)
    b = jax.random.uniform(kb, (1, fan_out), jnp.float32, -bound, bound)
    return w, b


if __name__ == "__main__":
    # Shapes consistent with the module: x is [batch, D_in].  Batch 512 with
    # tile_n=256 gives a 2-step grid (minimal per-step overhead while keeping
    # one step per TensorCore on v7x megacore).
    N, D_in, H, D_out = 512, 32, 64, 16
    TILE_N = 256

    key = jax.random.PRNGKey(0)
    kx, k1, k2, k3, k4 = jax.random.split(key, 5)

    x = jax.random.normal(kx, (N, D_in), jnp.float32)

    w1, b1 = init_linear_params(k1, D_in, H)
    w11, b11 = init_linear_params(k2, H, H)
    w12, b12 = init_linear_params(k3, H, H)
    w2, b2 = init_linear_params(k4, H, D_out)
    params = (w1, b1, w11, b11, w12, b12, w2, b2)

    # One-time parameter prep (padding + bf16 casts) hoisted out of forward.
    prepped, d_out, d_out_p = prepare_params(params)
    prepped = jax.block_until_ready(prepped)

    y = two_layer_net_forward(x, prepped, d_out, d_out_p, tile_n=TILE_N)
    y = jax.block_until_ready(y)

    # Sanity check against a pure-JAX f32 reference of the same forward pass.
    # Tolerances are relaxed because the kernel uses bf16 MXU operands and an
    # approximate reciprocal for the softmax normalization.
    def ref(x):
        h = jnp.maximum(x @ w1 + b1, 0.0)
        h = jnp.maximum(h @ w11 + b11, 0.0)
        h = jnp.maximum(h @ w12 + b12, 0.0)
        logits = h @ w2 + b2
        return jax.nn.softmax(logits, axis=1)

    y_ref = ref(x)
    assert y.shape == (N, D_out)
    assert jnp.allclose(y, y_ref, atol=2e-2, rtol=2e-2)
    assert jnp.allclose(jnp.sum(y, axis=1), jnp.ones((N,)), atol=5e-3)

    print("KERNEL_OK")
</pallas_src>

<mosaic_0001>
module attributes {stable_mosaic.version = 11 : i64} {
  func.func @mlp_softmax_kernel(%arg0: i32, %arg1: memref<256x32xf32, #tpu.memory_space<vmem>>, %arg2: memref<32x64xbf16, #tpu.memory_space<vmem>>, %arg3: memref<1x64xf32, #tpu.memory_space<vmem>>, %arg4: memref<64x64xbf16, #tpu.memory_space<vmem>>, %arg5: memref<1x64xf32, #tpu.memory_space<vmem>>, %arg6: memref<64x64xbf16, #tpu.memory_space<vmem>>, %arg7: memref<1x64xf32, #tpu.memory_space<vmem>>, %arg8: memref<64x128xbf16, #tpu.memory_space<vmem>>, %arg9: memref<1x128xf32, #tpu.memory_space<vmem>>, %arg10: memref<256x128xf32, #tpu.memory_space<vmem>>) attributes {dimension_semantics = [#tpu.dimension_semantics<parallel>], iteration_bounds = array<i64: 2>, scalar_prefetch = 0 : i64, scratch_operands = 0 : i64, tpu.core_type = #tpu.core_type<tc>, window_params = [{transform_indices = @transform_0, window_bounds = array<i64: 256, 32>}, {pipeline_mode = #tpu.pipeline_mode<synchronous>, transform_indices = @transform_1, window_bounds = array<i64: 32, 64>}, {pipeline_mode = #tpu.pipeline_mode<synchronous>, transform_indices = @transform_2, window_bounds = array<i64: 1, 64>}, {pipeline_mode = #tpu.pipeline_mode<synchronous>, transform_indices = @transform_3, window_bounds = array<i64: 64, 64>}, {pipeline_mode = #tpu.pipeline_mode<synchronous>, transform_indices = @transform_4, window_bounds = array<i64: 1, 64>}, {pipeline_mode = #tpu.pipeline_mode<synchronous>, transform_indices = @transform_5, window_bounds = array<i64: 64, 64>}, {pipeline_mode = #tpu.pipeline_mode<synchronous>, transform_indices = @transform_6, window_bounds = array<i64: 1, 64>}, {pipeline_mode = #tpu.pipeline_mode<synchronous>, transform_indices = @transform_7, window_bounds = array<i64: 64, 128>}, {pipeline_mode = #tpu.pipeline_mode<synchronous>, transform_indices = @transform_8, window_bounds = array<i64: 1, 128>}, {transform_indices = @transform_9, window_bounds = array<i64: 256, 128>}]} {
    %c0 = arith.constant 0 : index
    %c0_0 = arith.constant 0 : index
    %0 = vector.load %arg1[%c0, %c0_0] : memref<256x32xf32, #tpu.memory_space<vmem>>, vector<256x32xf32>
    %1 = arith.truncf %0 : vector<256x32xf32> to vector<256x32xbf16>
    %c0_1 = arith.constant 0 : index
    %c0_2 = arith.constant 0 : index
    %2 = vector.load %arg2[%c0_1, %c0_2] : memref<32x64xbf16, #tpu.memory_space<vmem>>, vector<32x64xbf16>
    %cst = arith.constant dense<0.000000e+00> : vector<256x64xf32>
    %3 = tpu.matmul %1, %2, %cst {dimension_numbers = #tpu.dot_dimension_numbers<[1], [0], [0], [1], [0, 0, 1, 1], [], []>} : vector<256x32xbf16>, vector<32x64xbf16>, vector<256x64xf32> -> vector<256x64xf32>
    %c0_3 = arith.constant 0 : index
    %c0_4 = arith.constant 0 : index
    %4 = vector.load %arg3[%c0_3, %c0_4] : memref<1x64xf32, #tpu.memory_space<vmem>>, vector<1x64xf32>
    %5 = vector.broadcast %4 : vector<1x64xf32> to vector<256x64xf32>
    %6 = arith.addf %3, %5 : vector<256x64xf32>
    %cst_5 = arith.constant 0.000000e+00 : f32
    %7 = vector.broadcast %cst_5 : f32 to vector<256x64xf32>
    %8 = arith.maximumf %6, %7 : vector<256x64xf32>
    %9 = arith.truncf %8 : vector<256x64xf32> to vector<256x64xbf16>
    %c0_6 = arith.constant 0 : index
    %c0_7 = arith.constant 0 : index
    %10 = vector.load %arg4[%c0_6, %c0_7] : memref<64x64xbf16, #tpu.memory_space<vmem>>, vector<64x64xbf16>
    %cst_8 = arith.constant dense<0.000000e+00> : vector<256x64xf32>
    %11 = tpu.matmul %9, %10, %cst_8 {dimension_numbers = #tpu.dot_dimension_numbers<[1], [0], [0], [1], [0, 0, 1, 1], [], []>} : vector<256x64xbf16>, vector<64x64xbf16>, vector<256x64xf32> -> vector<256x64xf32>
    %c0_9 = arith.constant 0 : index
    %c0_10 = arith.constant 0 : index
    %12 = vector.load %arg5[%c0_9, %c0_10] : memref<1x64xf32, #tpu.memory_space<vmem>>, vector<1x64xf32>
    %13 = vector.broadcast %12 : vector<1x64xf32> to vector<256x64xf32>
    %14 = arith.addf %11, %13 : vector<256x64xf32>
    %cst_11 = arith.constant 0.000000e+00 : f32
    %15 = vector.broadcast %cst_11 : f32 to vector<256x64xf32>
    %16 = arith.maximumf %14, %15 : vector<256x64xf32>
    %17 = arith.truncf %16 : vector<256x64xf32> to vector<256x64xbf16>
    %c0_12 = arith.constant 0 : index
    %c0_13 = arith.constant 0 : index
    %18 = vector.load %arg6[%c0_12, %c0_13] : memref<64x64xbf16, #tpu.memory_space<vmem>>, vector<64x64xbf16>
    %cst_14 = arith.constant dense<0.000000e+00> : vector<256x64xf32>
    %19 = tpu.matmul %17, %18, %cst_14 {dimension_numbers = #tpu.dot_dimension_numbers<[1], [0], [0], [1], [0, 0, 1, 1], [], []>} : vector<256x64xbf16>, vector<64x64xbf16>, vector<256x64xf32> -> vector<256x64xf32>
    %c0_15 = arith.constant 0 : index
    %c0_16 = arith.constant 0 : index
    %20 = vector.load %arg7[%c0_15, %c0_16] : memref<1x64xf32, #tpu.memory_space<vmem>>, vector<1x64xf32>
    %21 = vector.broadcast %20 : vector<1x64xf32> to vector<256x64xf32>
    %22 = arith.addf %19, %21 : vector<256x64xf32>
    %cst_17 = arith.constant 0.000000e+00 : f32
    %23 = vector.broadcast %cst_17 : f32 to vector<256x64xf32>
    %24 = arith.maximumf %22, %23 : vector<256x64xf32>
    %25 = arith.truncf %24 : vector<256x64xf32> to vector<256x64xbf16>
    %c0_18 = arith.constant 0 : index
    %c0_19 = arith.constant 0 : index
    %26 = vector.load %arg8[%c0_18, %c0_19] : memref<64x128xbf16, #tpu.memory_space<vmem>>, vector<64x128xbf16>
    %cst_20 = arith.constant dense<0.000000e+00> : vector<256x128xf32>
    %27 = tpu.matmul %25, %26, %cst_20 {dimension_numbers = #tpu.dot_dimension_numbers<[1], [0], [0], [1], [0, 0, 1, 1], [], []>} : vector<256x64xbf16>, vector<64x128xbf16>, vector<256x128xf32> -> vector<256x128xf32>
    %c0_21 = arith.constant 0 : index
    %c0_22 = arith.constant 0 : index
    %28 = vector.load %arg9[%c0_21, %c0_22] : memref<1x128xf32, #tpu.memory_space<vmem>>, vector<1x128xf32>
    %29 = vector.broadcast %28 : vector<1x128xf32> to vector<256x128xf32>
    %30 = arith.addf %27, %29 : vector<256x128xf32>
    %cst_23 = arith.constant dense<0xFF800000> : vector<256xf32>
    %31 = vector.multi_reduction <maximumf>, %30, %cst_23 [1] : vector<256x128xf32> to vector<256xf32>
    %32 = vector.shape_cast %31 : vector<256xf32> to vector<256x1xf32>
    %33 = vector.broadcast %32 : vector<256x1xf32> to vector<256x128xf32>
    %34 = arith.subf %30, %33 : vector<256x128xf32>
    %35 = math.exp %34 : vector<256x128xf32>
    %cst_24 = arith.constant dense<0.000000e+00> : vector<256xf32>
    %36 = vector.multi_reduction <add>, %35, %cst_24 [1] : vector<256x128xf32> to vector<256xf32>
    %37 = vector.shape_cast %36 : vector<256xf32> to vector<256x1xf32>
    %38 = tpu.reciprocal %37 {approx = true} : vector<256x1xf32> -> vector<256x1xf32>
    %39 = vector.broadcast %38 : vector<256x1xf32> to vector<256x128xf32>
    %40 = arith.mulf %35, %39 : vector<256x128xf32>
    %c0_25 = arith.constant 0 : index
    %c0_26 = arith.constant 0 : index
    %41 = vector.load %arg10[%c0_25, %c0_26] : memref<256x128xf32, #tpu.memory_space<vmem>>, vector<256x128xf32>
    tpu.vector_store %arg10[%c0_25, %c0_26], %40 {strides = array<i32>} : memref<256x128xf32, #tpu.memory_space<vmem>>, vector<256x128xf32>,
    return
  }
  func.func @transform_0(%arg0: i32) -> (i32, i32) {
    %c0_i32 = arith.constant 0 : i32
    %c0_i32_0 = arith.constant 0 : i32
    return %arg0, %c0_i32 : i32, i32
  }
  func.func @transform_1(%arg0: i32) -> (i32, i32) {
    %c0_i32 = arith.constant 0 : i32
    %c0_i32_0 = arith.constant 0 : i32
    %c0_i32_1 = arith.constant 0 : i32
    return %c0_i32, %c0_i32_0 : i32, i32
  }
  func.func @transform_2(%arg0: i32) -> (i32, i32) {
    %c0_i32 = arith.constant 0 : i32
    %c0_i32_0 = arith.constant 0 : i32
    %c0_i32_1 = arith.constant 0 : i32
    return %c0_i32, %c0_i32_0 : i32, i32
  }
  func.func @transform_3(%arg0: i32) -> (i32, i32) {
    %c0_i32 = arith.constant 0 : i32
    %c0_i32_0 = arith.constant 0 : i32
    %c0_i32_1 = arith.constant 0 : i32
    return %c0_i32, %c0_i32_0 : i32, i32
  }
  func.func @transform_4(%arg0: i32) -> (i32, i32) {
    %c0_i32 = arith.constant 0 : i32
    %c0_i32_0 = arith.constant 0 : i32
    %c0_i32_1 = arith.constant 0 : i32
    return %c0_i32, %c0_i32_0 : i32, i32
  }
  func.func @transform_5(%arg0: i32) -> (i32, i32) {
    %c0_i32 = arith.constant 0 : i32
    %c0_i32_0 = arith.constant 0 : i32
    %c0_i32_1 = arith.constant 0 : i32
    return %c0_i32, %c0_i32_0 : i32, i32
  }
  func.func @transform_6(%arg0: i32) -> (i32, i32) {
    %c0_i32 = arith.constant 0 : i32
    %c0_i32_0 = arith.constant 0 : i32
    %c0_i32_1 = arith.constant 0 : i32
    return %c0_i32, %c0_i32_0 : i32, i32
  }
  func.func @transform_7(%arg0: i32) -> (i32, i32) {
    %c0_i32 = arith.constant 0 : i32
    %c0_i32_0 = arith.constant 0 : i32
    %c0_i32_1 = arith.constant 0 : i32
    return %c0_i32, %c0_i32_0 : i32, i32
  }
  func.func @transform_8(%arg0: i32) -> (i32, i32) {
    %c0_i32 = arith.constant 0 : i32
    %c0_i32_0 = arith.constant 0 : i32
    %c0_i32_1 = arith.constant 0 : i32
    return %c0_i32, %c0_i32_0 : i32, i32
  }
  func.func @transform_9(%arg0: i32) -> (i32, i32) {
    %c0_i32 = arith.constant 0 : i32
    %c0_i32_0 = arith.constant 0 : i32
    return %arg0, %c0_i32 : i32, i32
  }
}

</mosaic_0001>

<bundles_post_ra>
// kernel: tpu_custom_call.1
= control target key start
LH: loop header
LB: loop body
LE: loop exit
PB: predicated region body
PF: predicated region fallthrough
CT: control target
= control target key end

     0   :  { %14 = vsyncpa [#allocation3], 0  ;;  %s3212_s0 = inlined_call_operand.vmem [shape: f32[512,32], index: 0, kind: input, shape index: {}]   ;;  %s3213_s1 = inlined_call_operand.vmem [shape: bf16[32,64], index: 1, kind: input, shape index: {}]   ;;  %s3214_s2 = inlined_call_operand.vmem [shape: f32[1,64], index: 2, kind: input, shape index: {}]   ;;  %s3215_s3 = inlined_call_operand.vmem [shape: bf16[64,64], index: 3, kind: input, shape index: {}]   ;;  %s3216_s4 = inlined_call_operand.vmem [shape: f32[1,64], index: 4, kind: input, shape index: {}]   ;;  %s3217_s5 = inlined_call_operand.vmem [shape: bf16[64,64], index: 5, kind: input, shape index: {}]   ;;  %s3218_s6 = inlined_call_operand.vmem [shape: f32[1,64], index: 6, kind: input, shape index: {}]   ;;  %s3219_s7 = inlined_call_operand.vmem [shape: bf16[64,128], index: 7, kind: input, shape index: {}]   ;;  %s3220_s8 = inlined_call_operand.vmem [shape: f32[1,128], index: 8, kind: input, shape index: {}]   ;;  %s3221_s9 = inlined_call_operand.hbm [shape: f32[512,128], index: 9, kind: output, shape index: {}]  }
   0x1   :  { %16 = vsyncpa [#allocation3 + $0x1], 0  ;;  %s2528_s30 = smov 0   ;;  %s2530_s10 = smov 0  }
   0x2   :  { %s2532_s11 = smov 0   ;;  %s2534_s12 = smov 0  }
   0x3 LB: > { %s2549_s13 = sadd.s32 4294967295, %s2473_s12   ;;  %s1901_s14 = sadd.s32 4294967294, %s2473_s12   ;;  %s2473_s12 = sphi %s2534_s12, %s3227_s12   ;;  %s2469_s11 = sphi %s2532_s11, %s3226_s11   ;;  %s2465_s10 = sphi %s2530_s10, %s3225_s10   ;;  %s2461_s30 = sphi %s2528_s30, %s3224_s30  }
   0x4   : > { %s2553_s15 = sadd.s32 1, %s2473_s12   ;;  %s223_s16 = sadd.s32 1, %s2469_s11 }
   0x5   : > { %s220_s17 = ssub.s32 %s2473_s12, %s2553_s15  ;;  %p233_p0 = scmp.ne.s32.totalorder %s2469_s11, %s2465_s10 }
   0x6   : > { %p221_p1 = scmp.eq.s32.totalorder %s220_s17, 0  ;;  %p234_p2 = scmp.eq.s32.totalorder %s2549_s13, 1 }
   0x7   : > { %p239_p3 = scmp.ne.s32.totalorder %s2465_s10, %s2461_s30  ;;  %p240_p4 = scmp.eq.s32.totalorder %s1901_s14, 1 }
   0x8   : > { %s2564_s18 = scalar_select %p221_p1, %s2469_s11, %s223_s16  }
   0x9   : > { %p2566_p5 = por %p234_p2, %p233_p0  ;;  %p2570_p6 = por %p240_p4, %p239_p3 }
   0xa   : > { %p1904_p7 = scmp.ge.s32.totalorder %s2473_s12, 1  ;;  %p291_p8 = scmp.lt.s32.totalorder %s2473_s12, 3 }
   0xc   : > { %p292_p9 = pnand %p1904_p7, %p291_p8 }
   0xd   : > { %s1906_s23 = sshll.u32 (!%p292_p9), %s2549_s13, 5  ;;  %s324_s26 = sand.u32 (!%p292_p9), 1, %s2465_s10  }
   0xe   : > { %295 = sbr.rel (%p292_p9) target bundleno = 1231 (0x4cf), region = 56  ;;  %p328_p10 = scmp.lt.s32.totalorder (!%p292_p9), %s1906_s23, 63 }
   0xf   : > { %s1905_s27 = sshll.u32 (!%p292_p9), %s324_s26, 8  ;;  %s1995_s29 = sshll.u32 (!%p292_p9), %s2549_s13, 12 }
  0x10   : > { %s3164_s21 = scalar_lea.hbm (!%p292_p9), %s3221_s9, %s1995_s29  ;;  %s3172_s13 = scalar_lea.sflag (!%p292_p9), [#allocation3], %s324_s26 }
  0x13   : > { %v2271_v0 = vld [vmem:[%s3213_s1 + $0x8] sm:$0xff]   ;;  %v2272_v1 = vld [vmem:[%s3213_s1] sm:$0xff]   ;;  %v2273_v2 = vld [vmem:[%s3215_s3 + $0x18] sm:$0xff]   ;;  %s3229_s23 = smov (!%p328_p10, %s1906_s23), 63  ;;  %vm406_vm0 = vcmask 261120   ;;  %vm703_vm1 = vcmask 523264  }
  0x14   : > { %2074 = vmatprep.subr.bf16.mxu0 %v2271_v0  ;;  %2110 = vmatprep.subr.bf16.mxu1 %v2273_v2  ;;  %s1907_s28 = sshll.u32 %s3229_s23, 3  ;;  %v2274_v51 = vld [vmem:[%s3215_s3 + $0x10] sm:$0xff]   ;;  %v2275_v52 = vld [vmem:[%s3215_s3 + $0x8] sm:$0xff]   ;;  %v2276_v53 = vld [vmem:[%s3215_s3] sm:$0xff]   ;;  %s2475_s23 = smov [#allocation2]  }
  0x15   : > { %2075 = vmatpush3.bf16.msra.mxu0 %v2271_v0  ;;  %2111 = vmatpush3.bf16.msra.mxu1 %v2273_v2  ;;  %s2589_s16 = scalar_lea.vmem %s3212_s0, %s1907_s28  ;;  %v2277_v54 = vld [vmem:[%s3217_s5 + $0x18] sm:$0xff]   ;;  %v2278_v55 = vld [vmem:[%s3217_s5 + $0x10] sm:$0xff]   ;;  %v2279_v56 = vld [vmem:[%s3217_s5 + $0x8] sm:$0xff]   ;;  %s3096_s28 = scalar_lea.vmem [#allocation2], %s1905_s27 }
  0x16   : > { %2076 = vmatprep.subr.bf16.mxu0 %v2272_v1  ;;  %v335_v3 = vld [vmem:[%s2589_s16] sm:$0xff]  ;;  %v336_v4 = vld [vmem:[%s2589_s16 + $0x8] sm:$0xff]  ;;  %v337_v5 = vld [vmem:[%s2589_s16 + $0x10] sm:$0xff]  ;;  %2112 = vmatprep.subr.bf16.mxu1 %v2274_v51  ;;  %s1839_s14 = sshll.u32 %s3096_s28, 4  ;;  %s2417_s24 = sshll.u32 %s2475_s23, 4  ;;  %s3166_s14 = int_to_ptr.vmem [resolvable:$true] %s1839_s14  ;;  %s2418_s24 = int_to_ptr.vmem [resolvable:$false] %s2417_s24 }
  0x17   : > { %v367_v6 = vpack.c.bf16 %v336_v4, %v335_v3  ;;  %v338_v7 = vld [vmem:[%s2589_s16 + $0x18] sm:$0xff]  ;;  %v339_v8 = vld [vmem:[%s2589_s16 + $0x20] sm:$0xff]  ;;  %v340_v9 = vld [vmem:[%s2589_s16 + $0x28] sm:$0xff]  ;;  %s2413_s22 = scalar_lea.vmem %s3166_s14, 4096  ;;  %s2419_s25 = scalar_lea.vmem %s2418_s24, 8192 }
  0x18   : > { %v368_v10 = vpack.c.bf16 %v338_v7, %v337_v5  ;;  %v369_v11 = vpack.c.bf16 %v340_v9, %v339_v8  ;;  %v341_v12 = vld [vmem:[%s2589_s16 + $0x30] sm:$0xff]  ;;  %v342_v13 = vld [vmem:[%s2589_s16 + $0x38] sm:$0xff]  ;;  %v343_v14 = vld [vmem:[%s2589_s16 + $0x40] sm:$0xff]  ;;  %p2414_p11 = scmp.ne.s32.totalorder %s3166_s14, %s2413_s22  ;;  %p2420_p0 = scmp.lt.s32.totalorder %s3166_s14, %s2418_s24 }
  0x19   : > { %2077 = vmatpush3.bf16.msra.mxu0 %v2272_v1  ;;  %2078 = vmatprep.mubr.msk.bf16.mxu0 %vm406_vm0, %v367_v6  ;;  %v344_v15 = vld [vmem:[%s2589_s16 + $0x48] sm:$0xff]  ;;  %v370_v16 = vpack.c.bf16 %v342_v13, %v341_v12  ;;  %v345_v18 = vld [vmem:[%s2589_s16 + $0x50] sm:$0xff]  ;;  %v346_v19 = vld [vmem:[%s2589_s16 + $0x58] sm:$0xff]  ;;  %p2421_p1 = scmp.lt.s32.totalorder %s2419_s25, %s2413_s22 }
  0x1a   : > { %v371_v17 = vpack.c.bf16 %v344_v15, %v343_v14  ;;  %v347_v20 = vld [vmem:[%s2589_s16 + $0x60] sm:$0xff]  ;;  %v348_v21 = vld [vmem:[%s2589_s16 + $0x68] sm:$0xff]  ;;  %v372_v22 = vpack.c.bf16 %v346_v19, %v345_v18  ;;  %v349_v24 = vld [vmem:[%s2589_s16 + $0x70] sm:$0xff]  ;;  %2113 = vmatpush3.bf16.msra.mxu1 %v2274_v51  ;;  %2150 = vmatprep.subr.bf16.mxu0 %v2277_v54  ;;  %p2415_p12 = pnand %p2414_p11, %p2566_p5 }
  0x1b   : > { %v373_v23 = vpack.c.bf16 %v348_v21, %v347_v20  ;;  %v350_v25 = vld [vmem:[%s2589_s16 + $0x78] sm:$0xff]  ;;  %v351_v26 = vld [vmem:[%s2589_s16 + $0x80] sm:$0xff]  ;;  %v352_v27 = vld [vmem:[%s2589_s16 + $0x88] sm:$0xff]  ;;  %2114 = vmatprep.subr.bf16.mxu1 %v2275_v52  ;;  %p2422_p2 = por %p2421_p1, %p2420_p0 }
  0x1c   : > { %2079 = vmatmul.mubr.msk.bf16.vlgmr.msra.gmra.mxu0 %vm406_vm0, %v368_v10  ;;  %v374_v28 = vpack.c.bf16 %v350_v25, %v349_v24  ;;  %v375_v29 = vpack.c.bf16 %v352_v27, %v351_v26  ;;  %v353_v30 = vld [vmem:[%s2589_s16 + $0x90] sm:$0xff]  ;;  %v354_v31 = vld [vmem:[%s2589_s16 + $0x98] sm:$0xff]  ;;  %v355_v32 = vld [vmem:[%s2589_s16 + $0xa0] sm:$0xff]  ;;  %p2416_p13 = pneg %p2415_p12 }
  0x1d   : > { %2082 = vmatprep.mubr.msk.bf16.mxu0 %vm406_vm0, %v369_v11  ;;  %v356_v33 = vld [vmem:[%s2589_s16 + $0xa8] sm:$0xff]  ;;  %v376_v34 = vpack.c.bf16 %v354_v31, %v353_v30  ;;  %v357_v36 = vld [vmem:[%s2589_s16 + $0xb0] sm:$0xff]  ;;  %v358_v37 = vld [vmem:[%s2589_s16 + $0xb8] sm:$0xff]  ;;  %2151 = vmatpush3.bf16.msra.mxu0 %v2277_v54 }
  0x1e   : > { %v377_v35 = vpack.c.bf16 %v356_v33, %v355_v32  ;;  %v359_v38 = vld [vmem:[%s2589_s16 + $0xc0] sm:$0xff]  ;;  %v360_v39 = vld [vmem:[%s2589_s16 + $0xc8] sm:$0xff]  ;;  %v378_v40 = vpack.c.bf16 %v358_v37, %v357_v36  ;;  %v361_v42 = vld [vmem:[%s2589_s16 + $0xd0] sm:$0xff]  ;;  %2115 = vmatpush3.bf16.msra.mxu1 %v2275_v52  ;;  %2152 = vmatprep.subr.bf16.mxu0 %v2278_v55  ;;  %p2423_p3 = pnand %p2422_p2, %p2416_p13 }
  0x1f   : > { %v379_v41 = vpack.c.bf16 %v360_v39, %v359_v38  ;;  %v362_v43 = vld [vmem:[%s2589_s16 + $0xd8] sm:$0xff]  ;;  %v363_v44 = vld [vmem:[%s2589_s16 + $0xe0] sm:$0xff]  ;;  %v364_v45 = vld [vmem:[%s2589_s16 + $0xe8] sm:$0xff]  ;;  %2116 = vmatprep.subr.bf16.mxu1 %v2276_v53 }
  0x20   : > { %v380_v46 = vpack.c.bf16 %v362_v43, %v361_v42  ;;  %v381_v47 = vpack.c.bf16 %v364_v45, %v363_v44  ;;  %v365_v48 = vld [vmem:[%s2589_s16 + $0xf0] sm:$0xff]  ;;  %v366_v49 = vld [vmem:[%s2589_s16 + $0xf8] sm:$0xff]  ;;  %v2280_v57 = vld [vmem:[%s3217_s5] sm:$0xff]  }
  0x21   : > { %v382_v50 = vpack.c.bf16 %v366_v49, %v365_v48  ;;  %2153 = vmatpush3.bf16.msra.mxu0 %v2278_v55  ;;  %v2663_v60 = vld [vmem:[%s3214_s2] ss:$0 sm:$0xff] }
  0x22   : > { %2117 = vmatpush3.bf16.msra.mxu1 %v2276_v53  ;;  %2154 = vmatprep.subr.bf16.mxu0 %v2279_v56 }
  0x24   : > { %2083 = vmatmul.mubr.msk.bf16.gmra.mxu0 %vm406_vm0, %v370_v16 }
  0x25   : > { %2086 = vmatprep.mubr.msk.bf16.mxu0 %vm406_vm0, %v371_v17  ;;  %2155 = vmatpush3.bf16.msra.mxu0 %v2279_v56 }
  0x26   : > { %2156 = vmatprep.subr.bf16.mxu0 %v2280_v57 }
  0x29   : > { %2157 = vmatpush3.bf16.msra.mxu0 %v2280_v57 }
  0x2c   : > { %2087 = vmatmul.mubr.msk.bf16.gmra.mxu0 %vm406_vm0, %v372_v22 }
  0x2d   : > { %2090 = vmatprep.mubr.msk.bf16.mxu0 %vm406_vm0, %v373_v23 }
  0x34   : > { %2091 = vmatmul.mubr.msk.bf16.gmra.mxu0 %vm406_vm0, %v374_v28 }
  0x35   : > { %2094 = vmatprep.mubr.msk.bf16.mxu0 %vm406_vm0, %v375_v29 }
  0x3c   : > { %2095 = vmatmul.mubr.msk.bf16.gmra.mxu0 %vm406_vm0, %v376_v34 }
  0x3d   : > { %2098 = vmatprep.mubr.msk.bf16.mxu0 %vm406_vm0, %v377_v35 }
  0x44   : > { %2099 = vmatmul.mubr.msk.bf16.gmra.mxu0 %vm406_vm0, %v378_v40 }
  0x45   : > { %2102 = vmatprep.mubr.msk.bf16.mxu0 %vm406_vm0, %v379_v41 }
  0x4c   : > { %2103 = vmatmul.mubr.msk.bf16.gmra.mxu0 %vm406_vm0, %v380_v46 }
  0x4d   : > { %2106 = vmatprep.mubr.msk.bf16.mxu0 %vm406_vm0, %v381_v47 }
  0x54   : > { %2107 = vmatmul.mubr.msk.bf16.gmra.mxu0 %vm406_vm0, %v382_v50 }
  0xdc   : > { %v2080_v58 = vpop.f32.mrf.mxu0 }
  0xdd   : > { %v498_v0 = vadd.f32 %v2080_v58, %v2663_v60 }
  0xde   : > { %v489_v59 = vpop.f32.mrf.mxu0 }
  0xdf   : > { %v490_v62 = vadd.f32 %v2663_v60, %v489_v59  ;;  %v618_v7 = vmax.f32 %v498_v0, 0.0 }
  0xe0   : > { %v2081_v61 = vpop.f32.mrf.mxu0 }
  0xe1   : > { %v501_v63 = vadd.f32 %v2081_v61, %v2663_v60  ;;  %v616_v5 = vmax.f32 %v490_v62, 0.0 }
  0xe2   : > { %v492_v1 = vpop.f32.mrf.mxu0 }
  0xe3   : > { %v493_v2 = vadd.f32 %v2663_v60, %v492_v1  ;;  %v619_v3 = vmax.f32 %v501_v63, 0.0 }
  0xe4   : > { %v2084_v4 = vpop.f32.mrf.mxu0 }
  0xe5   : > { %v617_v6 = vmax.f32 %v493_v2, 0.0  ;;  %v649_v10 = vpack.c.bf16 %v619_v3, %v618_v7  ;;  %v514_v14 = vadd.f32 %v2084_v4, %v2663_v60 }
  0xe6   : > { %v505_v8 = vpop.f32.mrf.mxu0 }
  0xe7   : > { %v648_v9 = vpack.c.bf16 %v617_v6, %v616_v5  ;;  %v506_v12 = vadd.f32 %v2663_v60, %v505_v8  ;;  %v622_v21 = vmax.f32 %v514_v14, 0.0 }
  0xe8   : > { %v2085_v11 = vpop.f32.mrf.mxu0 }
  0xe9   : > { %v517_v13 = vadd.f32 %v2085_v11, %v2663_v60  ;;  %2118 = vmatprep.mubr.msk.bf16.mxu1 %vm703_vm1, %v648_v9  ;;  %v620_v19 = vmax.f32 %v506_v12, 0.0 }
  0xea   : > { %v508_v15 = vpop.f32.mrf.mxu0  ;;  %2119 = vmatmul.mubr.msk.bf16.vlgmr.msra.gmra.mxu1 %vm703_vm1, %v649_v10 }
  0xeb   : > { %v509_v16 = vadd.f32 %v2663_v60, %v508_v15  ;;  %v623_v17 = vmax.f32 %v517_v13, 0.0 }
  0xec   : > { %v2088_v18 = vpop.f32.mrf.mxu0 }
  0xed   : > { %v621_v20 = vmax.f32 %v509_v16, 0.0  ;;  %v651_v24 = vpack.c.bf16 %v623_v17, %v622_v21  ;;  %v530_v28 = vadd.f32 %v2088_v18, %v2663_v60 }
  0xee   : > { %v521_v22 = vpop.f32.mrf.mxu0 }
  0xef   : > { %v650_v23 = vpack.c.bf16 %v621_v20, %v620_v19  ;;  %v522_v26 = vadd.f32 %v2663_v60, %v521_v22  ;;  %v626_v35 = vmax.f32 %v530_v28, 0.0 }
  0xf0   : > { %v2089_v25 = vpop.f32.mrf.mxu0 }
  0xf1   : > { %v533_v27 = vadd.f32 %v2089_v25, %v2663_v60  ;;  %2122 = vmatprep.mubr.msk.bf16.mxu1 %vm703_vm1, %v650_v23  ;;  %v624_v33 = vmax.f32 %v522_v26, 0.0 }
  0xf2   : > { %v524_v29 = vpop.f32.mrf.mxu0  ;;  %2123 = vmatmul.mubr.msk.bf16.gmra.mxu1 %vm703_vm1, %v651_v24 }
  0xf3   : > { %v525_v30 = vadd.f32 %v2663_v60, %v524_v29  ;;  %v627_v31 = vmax.f32 %v533_v27, 0.0 }
  0xf4   : > { %v2092_v32 = vpop.f32.mrf.mxu0 }
  0xf5   : > { %v625_v34 = vmax.f32 %v525_v30, 0.0  ;;  %v653_v38 = vpack.c.bf16 %v627_v31, %v626_v35  ;;  %v546_v42 = vadd.f32 %v2092_v32, %v2663_v60 }
  0xf6   : > { %v537_v36 = vpop.f32.mrf.mxu0 }
  0xf7   : > { %v652_v37 = vpack.c.bf16 %v625_v34, %v624_v33  ;;  %v538_v40 = vadd.f32 %v2663_v60, %v537_v36  ;;  %v630_v49 = vmax.f32 %v546_v42, 0.0 }
  0xf8   : > { %v2093_v39 = vpop.f32.mrf.mxu0 }
  0xf9   : > { %v549_v41 = vadd.f32 %v2093_v39, %v2663_v60  ;;  %2126 = vmatprep.mubr.msk.bf16.mxu1 %vm703_vm1, %v652_v37  ;;  %v628_v47 = vmax.f32 %v538_v40, 0.0 }
  0xfa   : > { %v540_v43 = vpop.f32.mrf.mxu0  ;;  %2127 = vmatmul.mubr.msk.bf16.gmra.mxu1 %vm703_vm1, %v653_v38 }
  0xfb   : > { %v541_v44 = vadd.f32 %v2663_v60, %v540_v43  ;;  %v631_v45 = vmax.f32 %v549_v41, 0.0 }
  0xfc   : > { %v2096_v46 = vpop.f32.mrf.mxu0 }
  0xfd   : > { %v629_v48 = vmax.f32 %v541_v44, 0.0  ;;  %v655_v52 = vpack.c.bf16 %v631_v45, %v630_v49  ;;  %v562_v56 = vadd.f32 %v2096_v46, %v2663_v60  ;;  %v2281_v44 = vld [vmem:[%s3219_s7 + $0x18] sm:$0xff]   ;;  %v2282_v45 = vld [vmem:[%s3219_s7 + $0x10] sm:$0xff]   ;;  %v2284_v46 = vld [vmem:[%s3219_s7] sm:$0xff]  }
  0xfe   : > { %v553_v50 = vpop.f32.mrf.mxu0  ;;  %2190 = vmatprep.subr.bf16.mxu1 %v2281_v44  ;;  %v2728_v49 = vld [vmem:[%s3216_s4] ss:$0 sm:$0xff] }
  0xff   : > { %v654_v51 = vpack.c.bf16 %v629_v48, %v628_v47  ;;  %v554_v54 = vadd.f32 %v2663_v60, %v553_v50  ;;  %v634_v0 = vmax.f32 %v562_v56, 0.0  ;;  %2191 = vmatpush3.bf16.msra.mxu1 %v2281_v44 }
 0x100   : > { %v2097_v53 = vpop.f32.mrf.mxu0  ;;  %2192 = vmatprep.subr.bf16.mxu1 %v2282_v45 }
 0x101   : > { %v565_v55 = vadd.f32 %v2097_v53, %v2663_v60  ;;  %2130 = vmatprep.mubr.msk.bf16.mxu1 %vm703_vm1, %v654_v51  ;;  %v632_v62 = vmax.f32 %v554_v54, 0.0 }
 0x102   : > { %v556_v57 = vpop.f32.mrf.mxu0  ;;  %2131 = vmatmul.mubr.msk.bf16.gmra.mxu1 %vm703_vm1, %v655_v52 }
 0x103   : > { %v557_v58 = vadd.f32 %v2663_v60, %v556_v57  ;;  %v635_v59 = vmax.f32 %v565_v55, 0.0  ;;  %2193 = vmatpush3.bf16.msra.mxu1 %v2282_v45 }
 0x104   : > { %v2100_v61 = vpop.f32.mrf.mxu0 }
 0x105   : > { %v633_v63 = vmax.f32 %v557_v58, 0.0  ;;  %v657_v3 = vpack.c.bf16 %v635_v59, %v634_v0  ;;  %v578_v7 = vadd.f32 %v2100_v61, %v2663_v60 }
 0x106   : > { %v569_v1 = vpop.f32.mrf.mxu0 }
 0x107   : > { %v656_v2 = vpack.c.bf16 %v633_v63, %v632_v62  ;;  %v570_v5 = vadd.f32 %v2663_v60, %v569_v1  ;;  %v638_v14 = vmax.f32 %v578_v7, 0.0 }
 0x108   : > { %v2101_v4 = vpop.f32.mrf.mxu0 }
 0x109   : > { %v581_v6 = vadd.f32 %v2101_v4, %v2663_v60  ;;  %2134 = vmatprep.mubr.msk.bf16.mxu1 %vm703_vm1, %v656_v2  ;;  %v636_v12 = vmax.f32 %v570_v5, 0.0 }
 0x10a   : > { %v572_v8 = vpop.f32.mrf.mxu0  ;;  %2135 = vmatmul.mubr.msk.bf16.gmra.mxu1 %vm703_vm1, %v657_v3 }
 0x10b   : > { %v573_v9 = vadd.f32 %v2663_v60, %v572_v8  ;;  %v639_v10 = vmax.f32 %v581_v6, 0.0 }
 0x10c   : > { %v2104_v11 = vpop.f32.mrf.mxu0 }
 0x10d   : > { %v637_v13 = vmax.f32 %v573_v9, 0.0  ;;  %v659_v17 = vpack.c.bf16 %v639_v10, %v638_v14  ;;  %v594_v21 = vadd.f32 %v2104_v11, %v2663_v60 }
 0x10e   : > { %v585_v15 = vpop.f32.mrf.mxu0 }
 0x10f   : > { %v658_v16 = vpack.c.bf16 %v637_v13, %v636_v12  ;;  %v586_v19 = vadd.f32 %v2663_v60, %v585_v15  ;;  %v642_v28 = vmax.f32 %v594_v21, 0.0 }
 0x110   : > { %v2105_v18 = vpop.f32.mrf.mxu0 }
 0x111   : > { %v597_v20 = vadd.f32 %v2105_v18, %v2663_v60  ;;  %2138 = vmatprep.mubr.msk.bf16.mxu1 %vm703_vm1, %v658_v16  ;;  %v640_v26 = vmax.f32 %v586_v19, 0.0 }
 0x112   : > { %v588_v22 = vpop.f32.mrf.mxu0  ;;  %2139 = vmatmul.mubr.msk.bf16.gmra.mxu1 %vm703_vm1, %v659_v17 }
 0x113   : > { %v589_v23 = vadd.f32 %v2663_v60, %v588_v22  ;;  %v643_v24 = vmax.f32 %v597_v20, 0.0 }
 0x114   : > { %v2108_v25 = vpop.f32.mrf.mxu0 }
 0x115   : > { %v641_v27 = vmax.f32 %v589_v23, 0.0  ;;  %v661_v31 = vpack.c.bf16 %v643_v24, %v642_v28  ;;  %v610_v35 = vadd.f32 %v2108_v25, %v2663_v60 }
 0x116   : > { %v601_v29 = vpop.f32.mrf.mxu0 }
 0x117   : > { %v660_v30 = vpack.c.bf16 %v641_v27, %v640_v26  ;;  %v602_v33 = vadd.f32 %v2663_v60, %v601_v29  ;;  %v646_v41 = vmax.f32 %v610_v35, 0.0 }
 0x118   : > { %v2109_v32 = vpop.f32.mrf.mxu0 }
 0x119   : > { %v613_v34 = vadd.f32 %v2109_v32, %v2663_v60  ;;  %2142 = vmatprep.mubr.msk.bf16.mxu1 %vm703_vm1, %v660_v30  ;;  %v644_v39 = vmax.f32 %v602_v33, 0.0 }
 0x11a   : > { %v604_v36 = vpop.f32.mrf.mxu0  ;;  %2143 = vmatmul.mubr.msk.bf16.gmra.mxu1 %vm703_vm1, %v661_v31 }
 0x11b   : > { %v605_v37 = vadd.f32 %v2663_v60, %v604_v36  ;;  %v647_v38 = vmax.f32 %v613_v34, 0.0  ;;  %v2283_v60 = vld [vmem:[%s3219_s7 + $0x8] sm:$0xff]  }
 0x11c   : > { %2194 = vmatprep.subr.bf16.mxu1 %v2283_v60 }
 0x11d   : > { %v645_v40 = vmax.f32 %v605_v37, 0.0  ;;  %v663_v43 = vpack.c.bf16 %v647_v38, %v646_v41  ;;  %2195 = vmatpush3.bf16.msra.mxu1 %v2283_v60 }
 0x11e   : > { %2196 = vmatprep.subr.bf16.mxu1 %v2284_v46 }
 0x11f   : > { %v662_v42 = vpack.c.bf16 %v645_v40, %v644_v39 }
 0x121   : > { %2146 = vmatprep.mubr.msk.bf16.mxu1 %vm703_vm1, %v662_v42  ;;  %2197 = vmatpush3.bf16.msra.mxu1 %v2284_v46 }
 0x122   : > { %2147 = vmatmul.mubr.msk.bf16.gmra.mxu1 %vm703_vm1, %v663_v43 }
 0x1aa   : > { %v2120_v47 = vpop.f32.mrf.mxu1 }
 0x1ab   : > { %v795_v53 = vadd.f32 %v2120_v47, %v2728_v49 }
 0x1ac   : > { %v786_v48 = vpop.f32.mrf.mxu1 }
 0x1ad   : > { %v787_v51 = vadd.f32 %v2728_v49, %v786_v48  ;;  %v915_v61 = vmax.f32 %v795_v53, 0.0 }
 0x1ae   : > { %v2121_v50 = vpop.f32.mrf.mxu1 }
 0x1af   : > { %v798_v52 = vadd.f32 %v2121_v50, %v2728_v49  ;;  %v913_v58 = vmax.f32 %v787_v51, 0.0 }
 0x1b0   : > { %v789_v54 = vpop.f32.mrf.mxu1 }
 0x1b1   : > { %v790_v55 = vadd.f32 %v2728_v49, %v789_v54  ;;  %v916_v56 = vmax.f32 %v798_v52, 0.0 }
 0x1b2   : > { %v2124_v57 = vpop.f32.mrf.mxu1 }
 0x1b3   : > { %v914_v59 = vmax.f32 %v790_v55, 0.0  ;;  %v946_v0 = vpack.c.bf16 %v916_v56, %v915_v61  ;;  %v811_v4 = vadd.f32 %v2124_v57, %v2728_v49 }
 0x1b4   : > { %v802_v62 = vpop.f32.mrf.mxu1 }
 0x1b5   : > { %v945_v63 = vpack.c.bf16 %v914_v59, %v913_v58  ;;  %v803_v2 = vadd.f32 %v2728_v49, %v802_v62  ;;  %v919_v11 = vmax.f32 %v811_v4, 0.0 }
 0x1b6   : > { %v2125_v1 = vpop.f32.mrf.mxu1 }
 0x1b7   : > { %v814_v3 = vadd.f32 %v2125_v1, %v2728_v49  ;;  %2158 = vmatprep.mubr.msk.bf16.mxu0 %vm703_vm1, %v945_v63  ;;  %v917_v9 = vmax.f32 %v803_v2, 0.0 }
 0x1b8   : > { %v805_v5 = vpop.f32.mrf.mxu1  ;;  %2159 = vmatmul.mubr.msk.bf16.vlgmr.msra.gmra.mxu0 %vm703_vm1, %v946_v0 }
 0x1b9   : > { %v806_v6 = vadd.f32 %v2728_v49, %v805_v5  ;;  %v920_v7 = vmax.f32 %v814_v3, 0.0 }
 0x1ba   : > { %v2128_v8 = vpop.f32.mrf.mxu1 }
 0x1bb   : > { %v918_v10 = vmax.f32 %v806_v6, 0.0  ;;  %v948_v14 = vpack.c.bf16 %v920_v7, %v919_v11  ;;  %v827_v18 = vadd.f32 %v2128_v8, %v2728_v49 }
 0x1bc   : > { %v818_v12 = vpop.f32.mrf.mxu1 }
 0x1bd   : > { %v947_v13 = vpack.c.bf16 %v918_v10, %v917_v9  ;;  %v819_v16 = vadd.f32 %v2728_v49, %v818_v12  ;;  %v923_v25 = vmax.f32 %v827_v18, 0.0 }
 0x1be   : > { %v2129_v15 = vpop.f32.mrf.mxu1 }
 0x1bf   : > { %v830_v17 = vadd.f32 %v2129_v15, %v2728_v49  ;;  %2162 = vmatprep.mubr.msk.bf16.mxu0 %vm703_vm1, %v947_v13  ;;  %v921_v23 = vmax.f32 %v819_v16, 0.0 }
 0x1c0   : > { %v821_v19 = vpop.f32.mrf.mxu1  ;;  %2163 = vmatmul.mubr.msk.bf16.gmra.mxu0 %vm703_vm1, %v948_v14 }
 0x1c1   : > { %v822_v20 = vadd.f32 %v2728_v49, %v821_v19  ;;  %v924_v21 = vmax.f32 %v830_v17, 0.0 }
 0x1c2   : > { %v2132_v22 = vpop.f32.mrf.mxu1 }
 0x1c3   : > { %v922_v24 = vmax.f32 %v822_v20, 0.0  ;;  %v950_v28 = vpack.c.bf16 %v924_v21, %v923_v25  ;;  %v843_v32 = vadd.f32 %v2132_v22, %v2728_v49 }
 0x1c4   : > { %v834_v26 = vpop.f32.mrf.mxu1 }
 0x1c5   : > { %v949_v27 = vpack.c.bf16 %v922_v24, %v921_v23  ;;  %v835_v30 = vadd.f32 %v2728_v49, %v834_v26  ;;  %v927_v39 = vmax.f32 %v843_v32, 0.0 }
 0x1c6   : > { %v2133_v29 = vpop.f32.mrf.mxu1 }
 0x1c7   : > { %v846_v31 = vadd.f32 %v2133_v29, %v2728_v49  ;;  %2166 = vmatprep.mubr.msk.bf16.mxu0 %vm703_vm1, %v949_v27  ;;  %v925_v37 = vmax.f32 %v835_v30, 0.0 }
 0x1c8   : > { %v837_v33 = vpop.f32.mrf.mxu1  ;;  %2167 = vmatmul.mubr.msk.bf16.gmra.mxu0 %vm703_vm1, %v950_v28 }
 0x1c9   : > { %v838_v34 = vadd.f32 %v2728_v49, %v837_v33  ;;  %v928_v35 = vmax.f32 %v846_v31, 0.0 }
 0x1ca   : > { %v2136_v36 = vpop.f32.mrf.mxu1 }
 0x1cb   : > { %v926_v38 = vmax.f32 %v838_v34, 0.0  ;;  %v952_v42 = vpack.c.bf16 %v928_v35, %v927_v39  ;;  %v859_v60 = vadd.f32 %v2136_v36, %v2728_v49  ;;  %v2781_v36 = vld [vmem:[%s3218_s6] ss:$0 sm:$0xff] }
 0x1cc   : > { %v850_v40 = vpop.f32.mrf.mxu1 }
 0x1cd   : > { %v951_v41 = vpack.c.bf16 %v926_v38, %v925_v37  ;;  %v851_v44 = vadd.f32 %v2728_v49, %v850_v40  ;;  %v931_v53 = vmax.f32 %v859_v60, 0.0 }
 0x1ce   : > { %v2137_v43 = vpop.f32.mrf.mxu1 }
 0x1cf   : > { %v862_v45 = vadd.f32 %v2137_v43, %v2728_v49  ;;  %2170 = vmatprep.mubr.msk.bf16.mxu0 %vm703_vm1, %v951_v41  ;;  %v929_v51 = vmax.f32 %v851_v44, 0.0 }
 0x1d0   : > { %v853_v46 = vpop.f32.mrf.mxu1  ;;  %2171 = vmatmul.mubr.msk.bf16.gmra.mxu0 %vm703_vm1, %v952_v42 }
 0x1d1   : > { %v854_v47 = vadd.f32 %v2728_v49, %v853_v46  ;;  %v932_v48 = vmax.f32 %v862_v45, 0.0 }
 0x1d2   : > { %v2140_v50 = vpop.f32.mrf.mxu1 }
 0x1d3   : > { %v930_v52 = vmax.f32 %v854_v47, 0.0  ;;  %v954_v56 = vpack.c.bf16 %v932_v48, %v931_v53  ;;  %v875_v61 = vadd.f32 %v2140_v50, %v2728_v49 }
 0x1d4   : > { %v866_v54 = vpop.f32.mrf.mxu1 }
 0x1d5   : > { %v953_v55 = vpack.c.bf16 %v930_v52, %v929_v51  ;;  %v867_v58 = vadd.f32 %v2728_v49, %v866_v54  ;;  %v935_v4 = vmax.f32 %v875_v61, 0.0 }
 0x1d6   : > { %v2141_v57 = vpop.f32.mrf.mxu1 }
 0x1d7   : > { %v878_v59 = vadd.f32 %v2141_v57, %v2728_v49  ;;  %2174 = vmatprep.mubr.msk.bf16.mxu0 %vm703_vm1, %v953_v55  ;;  %v933_v2 = vmax.f32 %v867_v58, 0.0 }
 0x1d8   : > { %v869_v62 = vpop.f32.mrf.mxu1  ;;  %2175 = vmatmul.mubr.msk.bf16.gmra.mxu0 %vm703_vm1, %v954_v56 }
 0x1d9   : > { %v870_v63 = vadd.f32 %v2728_v49, %v869_v62  ;;  %v936_v0 = vmax.f32 %v878_v59, 0.0 }
 0x1da   : > { %v2144_v1 = vpop.f32.mrf.mxu1 }
 0x1db   : > { %v934_v3 = vmax.f32 %v870_v63, 0.0  ;;  %v956_v7 = vpack.c.bf16 %v936_v0, %v935_v4  ;;  %v891_v11 = vadd.f32 %v2144_v1, %v2728_v49 }
 0x1dc   : > { %v882_v5 = vpop.f32.mrf.mxu1 }
 0x1dd   : > { %v955_v6 = vpack.c.bf16 %v934_v3, %v933_v2  ;;  %v883_v9 = vadd.f32 %v2728_v49, %v882_v5  ;;  %v939_v18 = vmax.f32 %v891_v11, 0.0 }
 0x1de   : > { %v2145_v8 = vpop.f32.mrf.mxu1 }
 0x1df   : > { %v894_v10 = vadd.f32 %v2145_v8, %v2728_v49  ;;  %2178 = vmatprep.mubr.msk.bf16.mxu0 %vm703_vm1, %v955_v6  ;;  %v937_v16 = vmax.f32 %v883_v9, 0.0 }
 0x1e0   : > { %v885_v12 = vpop.f32.mrf.mxu1  ;;  %2179 = vmatmul.mubr.msk.bf16.gmra.mxu0 %vm703_vm1, %v956_v7 }
 0x1e1   : > { %v886_v13 = vadd.f32 %v2728_v49, %v885_v12  ;;  %v940_v14 = vmax.f32 %v894_v10, 0.0 }
 0x1e2   : > { %v2148_v15 = vpop.f32.mrf.mxu1 }
 0x1e3   : > { %v938_v17 = vmax.f32 %v886_v13, 0.0  ;;  %v958_v21 = vpack.c.bf16 %v940_v14, %v939_v18  ;;  %v907_v25 = vadd.f32 %v2148_v15, %v2728_v49 }
 0x1e4   : > { %v898_v19 = vpop.f32.mrf.mxu1 }
 0x1e5   : > { %v957_v20 = vpack.c.bf16 %v938_v17, %v937_v16  ;;  %v899_v23 = vadd.f32 %v2728_v49, %v898_v19  ;;  %v943_v31 = vmax.f32 %v907_v25, 0.0 }
 0x1e6   : > { %v2149_v22 = vpop.f32.mrf.mxu1 }
 0x1e7   : > { %v910_v24 = vadd.f32 %v2149_v22, %v2728_v49  ;;  %2182 = vmatprep.mubr.msk.bf16.mxu0 %vm703_vm1, %v957_v20  ;;  %v941_v29 = vmax.f32 %v899_v23, 0.0 }
 0x1e8   : > { %v901_v26 = vpop.f32.mrf.mxu1  ;;  %2183 = vmatmul.mubr.msk.bf16.gmra.mxu0 %vm703_vm1, %v958_v21 }
 0x1e9   : > { %v902_v27 = vadd.f32 %v2728_v49, %v901_v26  ;;  %v944_v28 = vmax.f32 %v910_v24, 0.0 }
 0x1eb   : > { %v942_v30 = vmax.f32 %v902_v27, 0.0  ;;  %v960_v33 = vpack.c.bf16 %v944_v28, %v943_v31 }
 0x1ed   : > { %v959_v32 = vpack.c.bf16 %v942_v30, %v941_v29 }
 0x1ef   : > { %2186 = vmatprep.mubr.msk.bf16.mxu0 %vm703_vm1, %v959_v32 }
 0x1f0   : > { %2187 = vmatmul.mubr.msk.bf16.gmra.mxu0 %vm703_vm1, %v960_v33 }
 0x278   : > { %v2160_v34 = vpop.f32.mrf.mxu0 }
 0x279   : > { %v1091_v39 = vadd.f32 %v2160_v34, %v2781_v36 }
 0x27a   : > { %v1082_v35 = vpop.f32.mrf.mxu0 }
 0x27b   : > { %v1083_v49 = vadd.f32 %v2781_v36, %v1082_v35  ;;  %v1211_v60 = vmax.f32 %v1091_v39, 0.0 }
 0x27c   : > { %v2161_v37 = vpop.f32.mrf.mxu0 }
 0x27d   : > { %v1094_v38 = vadd.f32 %v2161_v37, %v2781_v36  ;;  %v1209_v44 = vmax.f32 %v1083_v49, 0.0 }
 0x27e   : > { %v1085_v40 = vpop.f32.mrf.mxu0 }
 0x27f   : > { %v1086_v41 = vadd.f32 %v2781_v36, %v1085_v40  ;;  %v1212_v42 = vmax.f32 %v1094_v38, 0.0 }
 0x280   : > { %v2164_v43 = vpop.f32.mrf.mxu0 }
 0x281   : > { %v1210_v45 = vmax.f32 %v1086_v41, 0.0  ;;  %v1242_v48 = vpack.c.bf16 %v1212_v42, %v1211_v60  ;;  %v1107_v53 = vadd.f32 %v2164_v43, %v2781_v36 }
 0x282   : > { %v1098_v46 = vpop.f32.mrf.mxu0 }
 0x283   : > { %v1241_v47 = vpack.c.bf16 %v1210_v45, %v1209_v44  ;;  %v1099_v51 = vadd.f32 %v2781_v36, %v1098_v46  ;;  %v1215_v61 = vmax.f32 %v1107_v53, 0.0 }
 0x284   : > { %v2165_v50 = vpop.f32.mrf.mxu0 }
 0x285   : > { %v1110_v52 = vadd.f32 %v2165_v50, %v2781_v36  ;;  %2198 = vmatprep.mubr.msk.bf16.mxu1 %vm703_vm1, %v1241_v47  ;;  %v1213_v58 = vmax.f32 %v1099_v51, 0.0 }
 0x286   : > { %v1101_v54 = vpop.f32.mrf.mxu0  ;;  %2199 = vmatmul.mubr.msk.bf16.vlgmr.msra.gmra.mxu1 %vm703_vm1, %v1242_v48 }
 0x287   : > { %v1102_v55 = vadd.f32 %v2781_v36, %v1101_v54  ;;  %v1216_v56 = vmax.f32 %v1110_v52, 0.0 }
 0x288   : > { %v2168_v57 = vpop.f32.mrf.mxu0 }
 0x289   : > { %v1214_v59 = vmax.f32 %v1102_v55, 0.0  ;;  %v1244_v0 = vpack.c.bf16 %v1216_v56, %v1215_v61  ;;  %v1123_v4 = vadd.f32 %v2168_v57, %v2781_v36 }
 0x28a   : > { %v1114_v62 = vpop.f32.mrf.mxu0 }
 0x28b   : > { %v1243_v63 = vpack.c.bf16 %v1214_v59, %v1213_v58  ;;  %v1115_v2 = vadd.f32 %v2781_v36, %v1114_v62  ;;  %v1219_v11 = vmax.f32 %v1123_v4, 0.0 }
 0x28c   : > { %v2169_v1 = vpop.f32.mrf.mxu0 }
 0x28d   : > { %v1126_v3 = vadd.f32 %v2169_v1, %v2781_v36  ;;  %2202 = vmatprep.mubr.msk.bf16.mxu1 %vm703_vm1, %v1243_v63  ;;  %v1217_v9 = vmax.f32 %v1115_v2, 0.0 }
 0x28e   : > { %v1117_v5 = vpop.f32.mrf.mxu0  ;;  %2203 = vmatmul.mubr.msk.bf16.gmra.mxu1 %vm703_vm1, %v1244_v0 }
 0x28f   : > { %v1118_v6 = vadd.f32 %v2781_v36, %v1117_v5  ;;  %v1220_v7 = vmax.f32 %v1126_v3, 0.0 }
 0x290   : > { %v2172_v8 = vpop.f32.mrf.mxu0 }
 0x291   : > { %v1218_v10 = vmax.f32 %v1118_v6, 0.0  ;;  %v1246_v14 = vpack.c.bf16 %v1220_v7, %v1219_v11  ;;  %v1139_v18 = vadd.f32 %v2172_v8, %v2781_v36 }
 0x292   : > { %v1130_v12 = vpop.f32.mrf.mxu0 }
 0x293   : > { %v1245_v13 = vpack.c.bf16 %v1218_v10, %v1217_v9  ;;  %v1131_v16 = vadd.f32 %v2781_v36, %v1130_v12  ;;  %v1223_v25 = vmax.f32 %v1139_v18, 0.0 }
 0x294   : > { %v2173_v15 = vpop.f32.mrf.mxu0 }
 0x295   : > { %v1142_v17 = vadd.f32 %v2173_v15, %v2781_v36  ;;  %2206 = vmatprep.mubr.msk.bf16.mxu1 %vm703_vm1, %v1245_v13  ;;  %v1221_v23 = vmax.f32 %v1131_v16, 0.0 }
 0x296   : > { %v1133_v19 = vpop.f32.mrf.mxu0  ;;  %2207 = vmatmul.mubr.msk.bf16.gmra.mxu1 %vm703_vm1, %v1246_v14 }
 0x297   : > { %v1134_v20 = vadd.f32 %v2781_v36, %v1133_v19  ;;  %v1224_v21 = vmax.f32 %v1142_v17, 0.0 }
 0x298   : > { %v2176_v22 = vpop.f32.mrf.mxu0 }
 0x299   : > { %v1222_v24 = vmax.f32 %v1134_v20, 0.0  ;;  %v1248_v28 = vpack.c.bf16 %v1224_v21, %v1223_v25  ;;  %v1155_v32 = vadd.f32 %v2176_v22, %v2781_v36  ;;  %v2834_v20 = vld [vmem:[%s3220_s8] ss:$0 sm:$0xff] }
 0x29a   : > { %v1146_v26 = vpop.f32.mrf.mxu0 }
 0x29b   : > { %v1247_v27 = vpack.c.bf16 %v1222_v24, %v1221_v23  ;;  %v1147_v30 = vadd.f32 %v2781_v36, %v1146_v26  ;;  %v1227_v39 = vmax.f32 %v1155_v32, 0.0 }
 0x29c   : > { %v2177_v29 = vpop.f32.mrf.mxu0 }
 0x29d   : > { %v1158_v31 = vadd.f32 %v2177_v29, %v2781_v36  ;;  %2210 = vmatprep.mubr.msk.bf16.mxu1 %vm703_vm1, %v1247_v27  ;;  %v1225_v49 = vmax.f32 %v1147_v30, 0.0 }
 0x29e   : > { %v1149_v33 = vpop.f32.mrf.mxu0  ;;  %2211 = vmatmul.mubr.msk.bf16.gmra.mxu1 %vm703_vm1, %v1248_v28 }
 0x29f   : > { %v1150_v34 = vadd.f32 %v2781_v36, %v1149_v33  ;;  %v1228_v35 = vmax.f32 %v1158_v31, 0.0 }
 0x2a0   : > { %v2180_v37 = vpop.f32.mrf.mxu0 }
 0x2a1   : > { %v1226_v38 = vmax.f32 %v1150_v34, 0.0  ;;  %v1250_v42 = vpack.c.bf16 %v1228_v35, %v1227_v39  ;;  %v1171_v60 = vadd.f32 %v2180_v37, %v2781_v36 }
 0x2a2   : > { %v1162_v40 = vpop.f32.mrf.mxu0 }
 0x2a3   : > { %v1249_v41 = vpack.c.bf16 %v1226_v38, %v1225_v49  ;;  %v1163_v44 = vadd.f32 %v2781_v36, %v1162_v40  ;;  %v1231_v53 = vmax.f32 %v1171_v60, 0.0 }
 0x2a4   : > { %v2181_v43 = vpop.f32.mrf.mxu0 }
 0x2a5   : > { %v1174_v45 = vadd.f32 %v2181_v43, %v2781_v36  ;;  %2214 = vmatprep.mubr.msk.bf16.mxu1 %vm703_vm1, %v1249_v41  ;;  %v1229_v51 = vmax.f32 %v1163_v44, 0.0 }
 0x2a6   : > { %v1165_v46 = vpop.f32.mrf.mxu0  ;;  %2215 = vmatmul.mubr.msk.bf16.gmra.mxu1 %vm703_vm1, %v1250_v42 }
 0x2a7   : > { %v1166_v47 = vadd.f32 %v2781_v36, %v1165_v46  ;;  %v1232_v48 = vmax.f32 %v1174_v45, 0.0 }
 0x2a8   : > { %v2184_v50 = vpop.f32.mrf.mxu0 }
 0x2a9   : > { %v1230_v52 = vmax.f32 %v1166_v47, 0.0  ;;  %v1252_v56 = vpack.c.bf16 %v1232_v48, %v1231_v53  ;;  %v1187_v61 = vadd.f32 %v2184_v50, %v2781_v36 }
 0x2aa   : > { %v1178_v54 = vpop.f32.mrf.mxu0 }
 0x2ab   : > { %v1251_v55 = vpack.c.bf16 %v1230_v52, %v1229_v51  ;;  %v1179_v58 = vadd.f32 %v2781_v36, %v1178_v54  ;;  %v1235_v4 = vmax.f32 %v1187_v61, 0.0 }
 0x2ac   : > { %v2185_v57 = vpop.f32.mrf.mxu0 }
 0x2ad   : > { %v1190_v59 = vadd.f32 %v2185_v57, %v2781_v36  ;;  %2218 = vmatprep.mubr.msk.bf16.mxu1 %vm703_vm1, %v1251_v55  ;;  %v1233_v2 = vmax.f32 %v1179_v58, 0.0 }
 0x2ae   : > { %v1181_v62 = vpop.f32.mrf.mxu0  ;;  %2219 = vmatmul.mubr.msk.bf16.gmra.mxu1 %vm703_vm1, %v1252_v56 }
 0x2af   : > { %v1182_v63 = vadd.f32 %v2781_v36, %v1181_v62  ;;  %v1236_v0 = vmax.f32 %v1190_v59, 0.0 }
 0x2b0   : > { %v2188_v1 = vpop.f32.mrf.mxu0 }
 0x2b1   : > { %v1234_v3 = vmax.f32 %v1182_v63, 0.0  ;;  %v1254_v7 = vpack.c.bf16 %v1236_v0, %v1235_v4  ;;  %v1203_v11 = vadd.f32 %v2188_v1, %v2781_v36 }
 0x2b2   : > { %v1194_v5 = vpop.f32.mrf.mxu0 }
 0x2b3   : > { %v1253_v6 = vpack.c.bf16 %v1234_v3, %v1233_v2  ;;  %v1195_v9 = vadd.f32 %v2781_v36, %v1194_v5  ;;  %v1239_v17 = vmax.f32 %v1203_v11, 0.0 }
 0x2b4   : > { %v2189_v8 = vpop.f32.mrf.mxu0 }
 0x2b5   : > { %v1206_v10 = vadd.f32 %v2189_v8, %v2781_v36  ;;  %2222 = vmatprep.mubr.msk.bf16.mxu1 %vm703_vm1, %v1253_v6  ;;  %v1237_v15 = vmax.f32 %v1195_v9, 0.0 }
 0x2b6   : > { %v1197_v12 = vpop.f32.mrf.mxu0  ;;  %2223 = vmatmul.mubr.msk.bf16.gmra.mxu1 %vm703_vm1, %v1254_v7 }
 0x2b7   : > { %v1198_v13 = vadd.f32 %v2781_v36, %v1197_v12  ;;  %v1240_v14 = vmax.f32 %v1206_v10, 0.0 }
 0x2b9   : > { %v1238_v16 = vmax.f32 %v1198_v13, 0.0  ;;  %v1256_v19 = vpack.c.bf16 %v1240_v14, %v1239_v17 }
 0x2bb   : > { %v1255_v18 = vpack.c.bf16 %v1238_v16, %v1237_v15 }
 0x2bd   : > { %2226 = vmatprep.mubr.msk.bf16.mxu1 %vm703_vm1, %v1255_v18 }
 0x2be   : > { %2227 = vmatmul.mubr.msk.bf16.gmra.mxu1 %vm703_vm1, %v1256_v19 }
 0x346   : > { %v2200_v21 = vpop.f32.mrf.mxu1 }
 0x347   : > { %v2837_v22 = vadd.f32 %v2200_v21, %v2834_v20 }
 0x348   : > { %v1378_v36 = vpop.f32.mrf.mxu1 }
 0x349   : > { %v2840_v23 = vadd.f32 %v2834_v20, %v1378_v36  ;;  %1509 = vmax.xlane.f32.xlu1 %v2837_v22 }
 0x34a   : > { %v2201_v24 = vpop.f32.mrf.mxu1 }
 0x34b   : > { %v2844_v25 = vadd.f32 %v2201_v24, %v2834_v20  ;;  %1505 = vmax.xlane.f32.xlu0 %v2840_v23 }
 0x34c   : > { %v1381_v26 = vpop.f32.mrf.mxu1 }
 0x34d   : > { %v2848_v27 = vadd.f32 %v2834_v20, %v1381_v26  ;;  %1511 = vmax.xlane.f32.xlu1 %v2844_v25 }
 0x34e   : > { %v2204_v28 = vpop.f32.mrf.mxu1 }
 0x34f   : > { %1507 = vmax.xlane.f32.xlu0 %v2848_v27  ;;  %v2853_v30 = vadd.f32 %v2204_v28, %v2834_v20 }
 0x350   : > { %v1394_v29 = vpop.f32.mrf.mxu1 }
 0x351   : > { %v2860_v34 = vadd.f32 %v2834_v20, %v1394_v29 }
 0x352   : > { %v2205_v31 = vpop.f32.mrf.mxu1 }
 0x353   : > { %v2856_v32 = vadd.f32 %v2205_v31, %v2834_v20  ;;  %1517 = vmax.xlane.f32.xlu0 %v2853_v30 }
 0x354   : > { %v1397_v33 = vpop.f32.mrf.mxu1 }
 0x355   : > { %1519 = vmax.xlane.f32.xlu1 %v2856_v32  ;;  %v2864_v37 = vadd.f32 %v2834_v20, %v1397_v33 }
 0x356   : > { %v2208_v35 = vpop.f32.mrf.mxu1 }
 0x357   : > { %1513 = vmax.xlane.f32.xlu0 %v2860_v34  ;;  %v2868_v38 = vadd.f32 %v2208_v35, %v2834_v20 }
 0x358   : > { %v1410_v49 = vpop.f32.mrf.mxu1 }
 0x359   : > { %1515 = vmax.xlane.f32.xlu1 %v2864_v37  ;;  %v2876_v42 = vadd.f32 %v2834_v20, %v1410_v49 }
 0x35a   : > { %v2209_v39 = vpop.f32.mrf.mxu1 }
 0x35b   : > { %v2872_v40 = vadd.f32 %v2209_v39, %v2834_v20  ;;  %1525 = vmax.xlane.f32.xlu0 %v2868_v38 }
 0x35c   : > { %v1413_v41 = vpop.f32.mrf.mxu1 }
 0x35d   : > { %1527 = vmax.xlane.f32.xlu1 %v2872_v40  ;;  %v2880_v44 = vadd.f32 %v2834_v20, %v1413_v41 }
 0x35e   : > { %v2212_v43 = vpop.f32.mrf.mxu1 }
 0x35f   : > { %1521 = vmax.xlane.f32.xlu0 %v2876_v42  ;;  %v2884_v60 = vadd.f32 %v2212_v43, %v2834_v20 }
 0x360   : > { %v1426_v45 = vpop.f32.mrf.mxu1 }
 0x361   : > { %1523 = vmax.xlane.f32.xlu1 %v2880_v44  ;;  %v2892_v50 = vadd.f32 %v2834_v20, %v1426_v45 }
 0x362   : > { %v2213_v46 = vpop.f32.mrf.mxu1 }
 0x363   : > { %v2888_v47 = vadd.f32 %v2213_v46, %v2834_v20  ;;  %1533 = vmax.xlane.f32.xlu0 %v2884_v60 }
 0x364   : > { %v1429_v48 = vpop.f32.mrf.mxu1 }
 0x365   : > { %1535 = vmax.xlane.f32.xlu1 %v2888_v47  ;;  %v2896_v52 = vadd.f32 %v2834_v20, %v1429_v48 }
 0x366   : > { %v2216_v51 = vpop.f32.mrf.mxu1 }
 0x367   : > { %1529 = vmax.xlane.f32.xlu0 %v2892_v50  ;;  %v2900_v54 = vadd.f32 %v2216_v51, %v2834_v20 }
 0x368   : > { %v1442_v53 = vpop.f32.mrf.mxu1 }
 0x369   : > { %1531 = vmax.xlane.f32.xlu1 %v2896_v52  ;;  %v2908_v58 = vadd.f32 %v2834_v20, %v1442_v53 }
 0x36a   : > { %v2217_v55 = vpop.f32.mrf.mxu1 }
 0x36b   : > { %v2904_v56 = vadd.f32 %v2217_v55, %v2834_v20  ;;  %1541 = vmax.xlane.f32.xlu0 %v2900_v54 }
 0x36c   : > { %v1445_v57 = vpop.f32.mrf.mxu1 }
 0x36d   : > { %1543 = vmax.xlane.f32.xlu1 %v2904_v56  ;;  %v2912_v61 = vadd.f32 %v2834_v20, %v1445_v57 }
 0x36e   : > { %v2220_v59 = vpop.f32.mrf.mxu1 }
 0x36f   : > { %1537 = vmax.xlane.f32.xlu0 %v2908_v58  ;;  %v2916_v63 = vadd.f32 %v2220_v59, %v2834_v20 }
 0x370   : > { %v1458_v62 = vpop.f32.mrf.mxu1 }
 0x371   : > { %1539 = vmax.xlane.f32.xlu1 %v2912_v61  ;;  %v2924_v3 = vadd.f32 %v2834_v20, %v1458_v62 }
 0x372   : > { %v2221_v0 = vpop.f32.mrf.mxu1 }
 0x373   : > { %v2920_v1 = vadd.f32 %v2221_v0, %v2834_v20  ;;  %1549 = vmax.xlane.f32.xlu0 %v2916_v63 }
 0x374   : > { %v1461_v2 = vpop.f32.mrf.mxu1 }
 0x375   : > { %1551 = vmax.xlane.f32.xlu1 %v2920_v1  ;;  %v2928_v5 = vadd.f32 %v2834_v20, %v1461_v2 }
 0x376   : > { %v2224_v4 = vpop.f32.mrf.mxu1 }
 0x377   : > { %1545 = vmax.xlane.f32.xlu0 %v2924_v3  ;;  %v2932_v7 = vadd.f32 %v2224_v4, %v2834_v20 }
 0x378   : > { %v1474_v6 = vpop.f32.mrf.mxu1 }
 0x379   : > { %1547 = vmax.xlane.f32.xlu1 %v2928_v5  ;;  %v2940_v11 = vadd.f32 %v2834_v20, %v1474_v6 }
 0x37a   : > { %v2225_v8 = vpop.f32.mrf.mxu1 }
 0x37b   : > { %v2936_v9 = vadd.f32 %v2225_v8, %v2834_v20  ;;  %1557 = vmax.xlane.f32.xlu0 %v2932_v7 }
 0x37c   : > { %v1477_v10 = vpop.f32.mrf.mxu1 }
 0x37d   : > { %1559 = vmax.xlane.f32.xlu1 %v2936_v9  ;;  %v2944_v13 = vadd.f32 %v2834_v20, %v1477_v10 }
 0x37e   : > { %v2228_v12 = vpop.f32.mrf.mxu1 }
 0x37f   : > { %1553 = vmax.xlane.f32.xlu0 %v2940_v11  ;;  %v2953_v18 = vadd.f32 %v2228_v12, %v2834_v20 }
 0x380   : > { %v1490_v14 = vpop.f32.mrf.mxu1 }
 0x381   : > { %v2948_v15 = vadd.f32 %v2834_v20, %v1490_v14  ;;  %1555 = vmax.xlane.f32.xlu1 %v2944_v13 }
 0x382   : > { %v2229_v16 = vpop.f32.mrf.mxu1 }
 0x383   : > { %1561 = vmax.xlane.f32.xlu0 %v2948_v15  ;;  %v2961_v21 = vadd.f32 %v2229_v16, %v2834_v20 }
 0x384   : > { %v1493_v17 = vpop.f32.mrf.mxu1 }
 0x385   : > { %v2956_v19 = vadd.f32 %v2834_v20, %v1493_v17 }
 0x387   : > { %1563 = vmax.xlane.f32.xlu1 %v2956_v19  ;;  %1565 = vmax.xlane.f32.xlu0 %v2953_v18 }
 0x38b   : > { %1567 = vmax.xlane.f32.xlu1 %v2961_v21 }
 0x3d2   : > { %v1510_v36 = vpop.xlane.xlu1 %1509 }
 0x3d3   : > { %v1571_v24 = vsub.f32 %v2837_v22, %v1510_v36 }
 0x3d4   : > { %v1506_v26 = vpop.xlane.xlu0 %1505 }
 0x3d5   : > { %v1605_v28 = vmul.f32 1.442695, %v1571_v24  ;;  %v1569_v29 = vsub.f32 %v2840_v23, %v1506_v26 }
 0x3d6   : > { %v1512_v31 = vpop.xlane.xlu1 %1511 }
 0x3d7   : > { %2285 = vpow2.f32 %v1605_v28  ;;  %v1601_v33 = vmul.f32 1.442695, %v1569_v29  ;;  %v1572_v35 = vsub.f32 %v2844_v25, %v1512_v31 }
 0x3d8   : > { %v1508_v49 = vpop.xlane.xlu0 %1507 }
 0x3d9   : > { %v1607_v39 = vmul.f32 1.442695, %v1572_v35  ;;  %v1570_v41 = vsub.f32 %v2848_v27, %v1508_v49  ;;  %2287 = vpow2.f32 %v1601_v33 }
 0x3db   : > { %2289 = vpow2.f32 %v1607_v39  ;;  %v1603_v20 = vmul.f32 1.442695, %v1570_v41 }
 0x3dc   : > { %v1518_v43 = vpop.xlane.xlu0 %1517 }
 0x3dd   : > { %v1575_v45 = vsub.f32 %v2853_v30, %v1518_v43  ;;  %2291 = vpow2.f32 %v1603_v20 }
 0x3de   : > { %v1520_v22 = vpop.xlane.xlu1 %1519 }
 0x3df   : > { %v1613_v46 = vmul.f32 1.442695, %v1575_v45  ;;  %v1576_v23 = vsub.f32 %v2856_v32, %v1520_v22 }
 0x3e0   : > { %v1514_v48 = vpop.xlane.xlu0 %1513 }
 0x3e1   : > { %2293 = vpow2.f32 %v1613_v46  ;;  %v1615_v51 = vmul.f32 1.442695, %v1576_v23  ;;  %v1573_v25 = vsub.f32 %v2860_v34, %v1514_v48 }
 0x3e2   : > { %v1516_v53 = vpop.xlane.xlu1 %1515 }
 0x3e3   : > { %2295 = vpow2.f32 %v1615_v51  ;;  %v1609_v55 = vmul.f32 1.442695, %v1573_v25  ;;  %v1574_v27 = vsub.f32 %v2864_v37, %v1516_v53 }
 0x3e4   : > { %v2972_v57 = vpop.eup %2285  ;;  %v1526_v59 = vpop.xlane.xlu0 %1525 }
 0x3e5   : > { %2297 = vpow2.f32 %v1609_v55  ;;  %v1611_v30 = vmul.f32 1.442695, %v1574_v27  ;;  %v1579_v62 = vsub.f32 %v2868_v38, %v1526_v59  ;;  %1669 = vadd.xlane.f32.xlu0 %v2972_v57 }
 0x3e6   : > { %v1528_v32 = vpop.xlane.xlu1 %1527  ;;  %v2976_v0 = vpop.eup %2287 }
 0x3e7   : > { %2299 = vpow2.f32 %v1611_v30  ;;  %v1621_v2 = vmul.f32 1.442695, %v1579_v62  ;;  %v1580_v34 = vsub.f32 %v2872_v40, %v1528_v32 }
 0x3e8   : > { %v2979_v4 = vpop.eup %2289  ;;  %v1522_v6 = vpop.xlane.xlu0 %1521 }
 0x3e9   : > { %2301 = vpow2.f32 %v1621_v2  ;;  %v1623_v37 = vmul.f32 1.442695, %v1580_v34  ;;  %v1577_v8 = vsub.f32 %v2876_v42, %v1522_v6  ;;  %1671 = vadd.xlane.f32.xlu1 %v2979_v4  ;;  %1665 = vadd.xlane.f32.xlu0 %v2976_v0 }
 0x3ea   : > { %v1524_v38 = vpop.xlane.xlu1 %1523  ;;  %v2985_v14 = vpop.eup %2291 }
 0x3eb   : > { %2303 = vpow2.f32 %v1623_v37  ;;  %v1617_v10 = vmul.f32 1.442695, %v1577_v8  ;;  %v1578_v12 = vsub.f32 %v2880_v44, %v1524_v38 }
 0x3ec   : > { %v1534_v16 = vpop.xlane.xlu0 %1533 }
 0x3ed   : > { %2305 = vpow2.f32 %v1617_v10  ;;  %v1619_v40 = vmul.f32 1.442695, %v1578_v12  ;;  %v1583_v17 = vsub.f32 %v2884_v60, %v1534_v16  ;;  %1667 = vadd.xlane.f32.xlu1 %v2985_v14 }
 0x3ee   : > { %v2989_v36 = vpop.eup %2293  ;;  %v1536_v42 = vpop.xlane.xlu1 %1535 }
 0x3ef   : > { %2307 = vpow2.f32 %v1619_v40  ;;  %v1629_v24 = vmul.f32 1.442695, %v1583_v17  ;;  %v1584_v26 = vsub.f32 %v2888_v47, %v1536_v42  ;;  %1677 = vadd.xlane.f32.xlu0 %v2989_v36 }
 0x3f0   : > { %v2993_v28 = vpop.eup %2295  ;;  %v1530_v44 = vpop.xlane.xlu0 %1529 }
 0x3f1   : > { %2309 = vpow2.f32 %v1629_v24  ;;  %v1631_v29 = vmul.f32 1.442695, %v1584_v26  ;;  %v1581_v31 = vsub.f32 %v2892_v50, %v1530_v44  ;;  %1679 = vadd.xlane.f32.xlu1 %v2993_v28 }
 0x3f2   : > { %v2997_v60 = vpop.eup %2297  ;;  %v1532_v33 = vpop.xlane.xlu1 %1531 }
 0x3f3   : > { %2311 = vpow2.f32 %v1631_v29  ;;  %v1625_v35 = vmul.f32 1.442695, %v1581_v31  ;;  %v1582_v49 = vsub.f32 %v2896_v52, %v1532_v33  ;;  %1673 = vadd.xlane.f32.xlu0 %v2997_v60 }
 0x3f4   : > { %v3001_v47 = vpop.eup %2299  ;;  %v1542_v39 = vpop.xlane.xlu0 %1541 }
 0x3f5   : > { %2313 = vpow2.f32 %v1625_v35  ;;  %v1627_v41 = vmul.f32 1.442695, %v1582_v49  ;;  %v1587_v20 = vsub.f32 %v2900_v54, %v1542_v39  ;;  %1675 = vadd.xlane.f32.xlu1 %v3001_v47 }
 0x3f6   : > { %v3005_v50 = vpop.eup %2301  ;;  %v1544_v43 = vpop.xlane.xlu1 %1543 }
 0x3f7   : > { %2315 = vpow2.f32 %v1627_v41  ;;  %v1637_v45 = vmul.f32 1.442695, %v1587_v20  ;;  %v1588_v22 = vsub.f32 %v2904_v56, %v1544_v43  ;;  %1685 = vadd.xlane.f32.xlu0 %v3005_v50 }
 0x3f8   : > { %v3009_v52 = vpop.eup %2303  ;;  %v1538_v46 = vpop.xlane.xlu0 %1537 }
 0x3f9   : > { %2317 = vpow2.f32 %v1637_v45  ;;  %v1639_v23 = vmul.f32 1.442695, %v1588_v22  ;;  %v1585_v48 = vsub.f32 %v2908_v58, %v1538_v46  ;;  %1687 = vadd.xlane.f32.xlu1 %v3009_v52 }
 0x3fa   : > { %v3013_v54 = vpop.eup %2305  ;;  %v1540_v51 = vpop.xlane.xlu1 %1539 }
 0x3fb   : > { %2319 = vpow2.f32 %v1639_v23  ;;  %v1633_v25 = vmul.f32 1.442695, %v1585_v48  ;;  %v1586_v53 = vsub.f32 %v2912_v61, %v1540_v51  ;;  %1681 = vadd.xlane.f32.xlu0 %v3013_v54 }
 0x3fc   : > { %v3017_v56 = vpop.eup %2307  ;;  %v1550_v55 = vpop.xlane.xlu0 %1549 }
 0x3fd   : > { %2321 = vpow2.f32 %v1633_v25  ;;  %v1635_v27 = vmul.f32 1.442695, %v1586_v53  ;;  %v1591_v59 = vsub.f32 %v2916_v63, %v1550_v55  ;;  %1683 = vadd.xlane.f32.xlu1 %v3017_v56 }
 0x3fe   : > { %v3021_v58 = vpop.eup %2309  ;;  %v1552_v30 = vpop.xlane.xlu1 %1551 }
 0x3ff   : > { %2323 = vpow2.f32 %v1635_v27  ;;  %v1645_v62 = vmul.f32 1.442695, %v1591_v59  ;;  %v1592_v32 = vsub.f32 %v2920_v1, %v1552_v30  ;;  %1693 = vadd.xlane.f32.xlu0 %v3021_v58 }
 0x400   : > { %v3025_v61 = vpop.eup %2311  ;;  %v1546_v2 = vpop.xlane.xlu0 %1545 }
 0x401   : > { %2325 = vpow2.f32 %v1645_v62  ;;  %v1647_v34 = vmul.f32 1.442695, %v1592_v32  ;;  %v1589_v6 = vsub.f32 %v2924_v3, %v1546_v2  ;;  %1695 = vadd.xlane.f32.xlu1 %v3025_v61 }
 0x402   : > { %v3029_v63 = vpop.eup %2313  ;;  %v1548_v37 = vpop.xlane.xlu1 %1547 }
 0x403   : > { %2327 = vpow2.f32 %v1647_v34  ;;  %v1641_v8 = vmul.f32 1.442695, %v1589_v6  ;;  %v1590_v38 = vsub.f32 %v2928_v5, %v1548_v37  ;;  %1689 = vadd.xlane.f32.xlu0 %v3029_v63 }
 0x404   : > { %v3033_v1 = vpop.eup %2315  ;;  %v1558_v10 = vpop.xlane.xlu0 %1557 }
 0x405   : > { %2329 = vpow2.f32 %v1641_v8  ;;  %v1643_v12 = vmul.f32 1.442695, %v1590_v38  ;;  %v1595_v16 = vsub.f32 %v2932_v7, %v1558_v10  ;;  %1691 = vadd.xlane.f32.xlu1 %v3033_v1 }
 0x406   : > { %v3037_v3 = vpop.eup %2317  ;;  %v1560_v40 = vpop.xlane.xlu1 %1559 }
 0x407   : > { %2331 = vpow2.f32 %v1643_v12  ;;  %v1653_v17 = vmul.f32 1.442695, %v1595_v16  ;;  %v1596_v42 = vsub.f32 %v2936_v9, %v1560_v40  ;;  %1701 = vadd.xlane.f32.xlu0 %v3037_v3 }
 0x408   : > { %v3041_v5 = vpop.eup %2319  ;;  %v1554_v24 = vpop.xlane.xlu0 %1553 }
 0x409   : > { %2333 = vpow2.f32 %v1653_v17  ;;  %v1655_v26 = vmul.f32 1.442695, %v1596_v42  ;;  %v1593_v44 = vsub.f32 %v2940_v11, %v1554_v24  ;;  %1703 = vadd.xlane.f32.xlu1 %v3041_v5 }
 0x40a   : > { %v3045_v7 = vpop.eup %2321  ;;  %v1556_v29 = vpop.xlane.xlu1 %1555 }
 0x40b   : > { %2335 = vpow2.f32 %v1655_v26  ;;  %v1649_v31 = vmul.f32 1.442695, %v1593_v44  ;;  %v1594_v33 = vsub.f32 %v2944_v13, %v1556_v29  ;;  %1697 = vadd.xlane.f32.xlu0 %v3045_v7 }
 0x40c   : > { %v3049_v9 = vpop.eup %2323  ;;  %v1562_v35 = vpop.xlane.xlu0 %1561 }
 0x40d   : > { %2337 = vpow2.f32 %v1649_v31  ;;  %v1651_v49 = vmul.f32 1.442695, %v1594_v33  ;;  %v1597_v39 = vsub.f32 %v2948_v15, %v1562_v35  ;;  %1699 = vadd.xlane.f32.xlu1 %v3049_v9 }
 0x40e   : > { %v3053_v11 = vpop.eup %2325 }
 0x40f   : > { %2339 = vpow2.f32 %v1651_v49  ;;  %v1657_v41 = vmul.f32 1.442695, %v1597_v39  ;;  %1709 = vadd.xlane.f32.xlu0 %v3053_v11 }
 0x410   : > { %v3056_v20 = vpop.eup %2327  ;;  %v1564_v13 = vpop.xlane.xlu1 %1563 }
 0x411   : > { %v1566_v43 = vpop.xlane.xlu0 %1565  ;;  %2341 = vpow2.f32 %v1657_v41  ;;  %v1598_v45 = vsub.f32 %v2956_v19, %v1564_v13  ;;  %1711 = vadd.xlane.f32.xlu1 %v3056_v20 }
 0x412   : > { %v1599_v22 = vsub.f32 %v2953_v18, %v1566_v43  ;;  %v3061_v15 = vpop.eup %2329 }
 0x413   : > { %v1659_v46 = vmul.f32 1.442695, %v1598_v45  ;;  %1705 = vadd.xlane.f32.xlu0 %v3061_v15 }
 0x414   : > { %v1661_v23 = vmul.f32 1.442695, %v1599_v22  ;;  %v3064_v48 = vpop.eup %2331  ;;  %v1568_v51 = vpop.xlane.xlu1 %1567 }
 0x415   : > { %2343 = vpow2.f32 %v1659_v46  ;;  %v1600_v25 = vsub.f32 %v2961_v21, %v1568_v51  ;;  %1707 = vadd.xlane.f32.xlu1 %v3064_v48 }
 0x416   : > { %v3068_v53 = vpop.eup %2333  ;;  %2345 = vpow2.f32 %v1661_v23 }
 0x417   : > { %v1663_v18 = vmul.f32 1.442695, %v1600_v25  ;;  %1717 = vadd.xlane.f32.xlu0 %v3068_v53 }
 0x418   : > { %v3071_v19 = vpop.eup %2335 }
 0x419   : > { %2347 = vpow2.f32 %v1663_v18  ;;  %1719 = vadd.xlane.f32.xlu1 %v3071_v19 }
 0x41a   : > { %v3074_v55 = vpop.eup %2337 }
 0x41b   : > { %1713 = vadd.xlane.f32.xlu0 %v3074_v55 }
 0x41c   : > { %v3077_v27 = vpop.eup %2339 }
 0x41d   : > { %1715 = vadd.xlane.f32.xlu1 %v3077_v27 }
 0x41e   : > { %v3080_v21 = vpop.eup %2341 }
 0x41f   : > { %1721 = vadd.xlane.f32.xlu0 %v3080_v21 }
 0x422   : > { %v3083_v59 = vpop.eup %2343 }
 0x423   : > { %v3085_v30 = vpop.eup %2345  ;;  %1723 = vadd.xlane.f32.xlu1 %v3083_v59 }
 0x424   : > { %1725 = vadd.xlane.f32.xlu0 %v3085_v30 }
 0x426   : > { %v3089_v62 = vpop.eup %2347 }
 0x427   : > { %1727 = vadd.xlane.f32.xlu1 %v3089_v62 }
 0x46e   : > { %v1670_v32 = vpop.xlane.xlu0 %1669 }
 0x46f   : > { %2349 = vrcp.f32 %v1670_v32 }
 0x472   : > { %v1672_v2 = vpop.xlane.xlu1 %1671  ;;  %v1666_v34 = vpop.xlane.xlu0 %1665 }
 0x473   : > { %2351 = vrcp.f32 %v1672_v2 }
 0x474   : > { %2353 = vrcp.f32 %v1666_v34 }
 0x476   : > { %v1668_v6 = vpop.xlane.xlu1 %1667 }
 0x477   : > { %2355 = vrcp.f32 %v1668_v6 }
 0x478   : > { %v1678_v37 = vpop.xlane.xlu0 %1677 }
 0x479   : > { %2357 = vrcp.f32 %v1678_v37 }
 0x47a   : > { %v1680_v8 = vpop.xlane.xlu1 %1679 }
 0x47b   : > { %2359 = vrcp.f32 %v1680_v8 }
 0x47c   : > { %v2350_v38 = vpop.eup %2349  ;;  %v1674_v10 = vpop.xlane.xlu0 %1673 }
 0x47d   : > { %v1763_v12 = vmul.f32 %v2350_v38, %v2972_v57  ;;  %2361 = vrcp.f32 %v1674_v10 }
 0x47e   : > { %v1676_v16 = vpop.xlane.xlu1 %1675 }
 0x47f   : > { %1795 = vst [vmem:[%s3096_s28 + $0x10] sm:$0xff] %v1763_v12  ;;  %2363 = vrcp.f32 %v1676_v16 }
 0x480   : > { %v2352_v40 = vpop.eup %2351  ;;  %v1686_v17 = vpop.xlane.xlu0 %1685 }
 0x481   : > { %v2354_v42 = vpop.eup %2353  ;;  %v1764_v24 = vmul.f32 %v2352_v40, %v2979_v4  ;;  %2365 = vrcp.f32 %v1686_v17 }
 0x482   : > { %v1761_v26 = vmul.f32 %v2354_v42, %v2976_v0  ;;  %v1688_v57 = vpop.xlane.xlu1 %1687 }
 0x483   : > { %1796 = vst [vmem:[%s3096_s28 + $0x18] sm:$0xff] %v1764_v24  ;;  %2367 = vrcp.f32 %v1688_v57 }
 0x484   : > { %v2356_v44 = vpop.eup %2355  ;;  %1793 = vst [vmem:[%s3096_s28] sm:$0xff] %v1761_v26  ;;  %v1682_v29 = vpop.xlane.xlu0 %1681 }
 0x485   : > { %v1762_v31 = vmul.f32 %v2356_v44, %v2985_v14  ;;  %2369 = vrcp.f32 %v1682_v29 }
 0x486   : > { %v2358_v33 = vpop.eup %2357  ;;  %v1684_v35 = vpop.xlane.xlu1 %1683 }
 0x487   : > { %1794 = vst [vmem:[%s3096_s28 + $0x8] sm:$0xff] %v1762_v31  ;;  %v1767_v4 = vmul.f32 %v2358_v33, %v2989_v36  ;;  %2371 = vrcp.f32 %v1684_v35 }
 0x488   : > { %v2360_v49 = vpop.eup %2359  ;;  %v1694_v0 = vpop.xlane.xlu0 %1693 }
 0x489   : > { %1799 = vst [vmem:[%s3096_s28 + $0x30] sm:$0xff] %v1767_v4  ;;  %v1768_v39 = vmul.f32 %v2360_v49, %v2993_v28  ;;  %2373 = vrcp.f32 %v1694_v0 }
 0x48a   : > { %v2362_v41 = vpop.eup %2361  ;;  %v1696_v13 = vpop.xlane.xlu1 %1695 }
 0x48b   : > { %1800 = vst [vmem:[%s3096_s28 + $0x38] sm:$0xff] %v1768_v39  ;;  %v1765_v14 = vmul.f32 %v2362_v41, %v2997_v60  ;;  %2375 = vrcp.f32 %v1696_v13 }
 0x48c   : > { %v2364_v43 = vpop.eup %2363  ;;  %v1690_v45 = vpop.xlane.xlu0 %1689 }
 0x48d   : > { %1797 = vst [vmem:[%s3096_s28 + $0x20] sm:$0xff] %v1765_v14  ;;  %v1766_v36 = vmul.f32 %v2364_v43, %v3001_v47  ;;  %2377 = vrcp.f32 %v1690_v45 }
 0x48e   : > { %v2366_v22 = vpop.eup %2365  ;;  %v1692_v46 = vpop.xlane.xlu1 %1691 }
 0x48f   : > { %1798 = vst [vmem:[%s3096_s28 + $0x28] sm:$0xff] %v1766_v36  ;;  %v1771_v28 = vmul.f32 %v2366_v22, %v3005_v50  ;;  %2379 = vrcp.f32 %v1692_v46 }
 0x490   : > { %v2368_v23 = vpop.eup %2367  ;;  %v1702_v51 = vpop.xlane.xlu0 %1701 }
 0x491   : > { %1803 = vst [vmem:[%s3096_s28 + $0x50] sm:$0xff] %v1771_v28  ;;  %v1772_v60 = vmul.f32 %v2368_v23, %v3009_v52  ;;  %2381 = vrcp.f32 %v1702_v51 }
 0x492   : > { %v2370_v25 = vpop.eup %2369  ;;  %v1704_v18 = vpop.xlane.xlu1 %1703 }
 0x493   : > { %1804 = vst [vmem:[%s3096_s28 + $0x58] sm:$0xff] %v1772_v60  ;;  %v1769_v47 = vmul.f32 %v2370_v25, %v3013_v54  ;;  %2383 = vrcp.f32 %v1704_v18 }
 0x494   : > { %v2372_v32 = vpop.eup %2371  ;;  %v1698_v2 = vpop.xlane.xlu0 %1697 }
 0x495   : > { %1801 = vst [vmem:[%s3096_s28 + $0x40] sm:$0xff] %v1769_v47  ;;  %v1770_v50 = vmul.f32 %v2372_v32, %v3017_v56  ;;  %2385 = vrcp.f32 %v1698_v2 }
 0x496   : > { %v2374_v34 = vpop.eup %2373  ;;  %v1700_v6 = vpop.xlane.xlu1 %1699 }
 0x497   : > { %1802 = vst [vmem:[%s3096_s28 + $0x48] sm:$0xff] %v1770_v50  ;;  %v1775_v52 = vmul.f32 %v2374_v34, %v3021_v58  ;;  %2387 = vrcp.f32 %v1700_v6 }
 0x498   : > { %v2376_v37 = vpop.eup %2375  ;;  %v1710_v8 = vpop.xlane.xlu0 %1709 }
 0x499   : > { %1807 = vst [vmem:[%s3096_s28 + $0x70] sm:$0xff] %v1775_v52  ;;  %v1776_v54 = vmul.f32 %v2376_v37, %v3025_v61  ;;  %2389 = vrcp.f32 %v1710_v8 }
 0x49a   : > { %v2378_v38 = vpop.eup %2377  ;;  %v1712_v10 = vpop.xlane.xlu1 %1711 }
 0x49b   : > { %1808 = vst [vmem:[%s3096_s28 + $0x78] sm:$0xff] %v1776_v54  ;;  %v1773_v56 = vmul.f32 %v2378_v38, %v3029_v63  ;;  %2391 = vrcp.f32 %v1712_v10 }
 0x49c   : > { %v2380_v12 = vpop.eup %2379  ;;  %v1706_v16 = vpop.xlane.xlu0 %1705 }
 0x49d   : > { %1805 = vst [vmem:[%s3096_s28 + $0x60] sm:$0xff] %v1773_v56  ;;  %v1774_v58 = vmul.f32 %v2380_v12, %v3033_v1  ;;  %2393 = vrcp.f32 %v1706_v16 }
 0x49e   : > { %v2382_v40 = vpop.eup %2381  ;;  %v1708_v17 = vpop.xlane.xlu1 %1707 }
 0x49f   : > { %1806 = vst [vmem:[%s3096_s28 + $0x68] sm:$0xff] %v1774_v58  ;;  %v1779_v61 = vmul.f32 %v2382_v40, %v3037_v3  ;;  %2395 = vrcp.f32 %v1708_v17 }
 0x4a0   : > { %v2384_v42 = vpop.eup %2383  ;;  %v1718_v24 = vpop.xlane.xlu0 %1717 }
 0x4a1   : > { %1811 = vst [vmem:[%s3096_s28 + $0x90] sm:$0xff] %v1779_v61  ;;  %v1780_v63 = vmul.f32 %v2384_v42, %v3041_v5  ;;  %2397 = vrcp.f32 %v1718_v24 }
 0x4a2   : > { %v2386_v26 = vpop.eup %2385  ;;  %v1720_v57 = vpop.xlane.xlu1 %1719 }
 0x4a3   : > { %1812 = vst [vmem:[%s3096_s28 + $0x98] sm:$0xff] %v1780_v63  ;;  %v1777_v1 = vmul.f32 %v2386_v26, %v3045_v7  ;;  %2399 = vrcp.f32 %v1720_v57 }
 0x4a4   : > { %v2388_v44 = vpop.eup %2387  ;;  %v1714_v29 = vpop.xlane.xlu0 %1713 }
 0x4a5   : > { %1809 = vst [vmem:[%s3096_s28 + $0x80] sm:$0xff] %v1777_v1  ;;  %v1778_v3 = vmul.f32 %v2388_v44, %v3049_v9  ;;  %2401 = vrcp.f32 %v1714_v29 }
 0x4a6   : > { %v2390_v31 = vpop.eup %2389  ;;  %v1716_v33 = vpop.xlane.xlu1 %1715 }
 0x4a7   : > { %1810 = vst [vmem:[%s3096_s28 + $0x88] sm:$0xff] %v1778_v3  ;;  %v1783_v5 = vmul.f32 %v2390_v31, %v3053_v11  ;;  %2403 = vrcp.f32 %v1716_v33 }
 0x4a8   : > { %v2392_v35 = vpop.eup %2391  ;;  %v1722_v4 = vpop.xlane.xlu0 %1721 }
 0x4a9   : > { %1815 = vst [vmem:[%s3096_s28 + $0xb0] sm:$0xff] %v1783_v5  ;;  %v1784_v7 = vmul.f32 %v2392_v35, %v3056_v20  ;;  %2405 = vrcp.f32 %v1722_v4 }
 0x4aa   : > { %v2394_v49 = vpop.eup %2393 }
 0x4ab   : > { %1816 = vst [vmem:[%s3096_s28 + $0xb8] sm:$0xff] %v1784_v7  ;;  %v1781_v9 = vmul.f32 %v2394_v49, %v3061_v15 }
 0x4ac   : > { %v2396_v0 = vpop.eup %2395  ;;  %v1724_v39 = vpop.xlane.xlu1 %1723 }
 0x4ad   : > { %1813 = vst [vmem:[%s3096_s28 + $0xa0] sm:$0xff] %v1781_v9  ;;  %v1782_v41 = vmul.f32 %v2396_v0, %v3064_v48  ;;  %2407 = vrcp.f32 %v1724_v39  ;;  %v1726_v11 = vpop.xlane.xlu0 %1725 }
 0x4ae   : > { %v2398_v13 = vpop.eup %2397  ;;  %2409 = vrcp.f32 %v1726_v11 }
 0x4af   : > { %1814 = vst [vmem:[%s3096_s28 + $0xa8] sm:$0xff] %v1782_v41  ;;  %v1787_v20 = vmul.f32 %v2398_v13, %v3068_v53 }
 0x4b0   : > { %v2400_v14 = vpop.eup %2399  ;;  %v1728_v43 = vpop.xlane.xlu1 %1727 }
 0x4b1   : > { %1819 = vst [vmem:[%s3096_s28 + $0xd0] sm:$0xff] %v1787_v20  ;;  %v1788_v15 = vmul.f32 %v2400_v14, %v3071_v19  ;;  %2411 = vrcp.f32 %v1728_v43 }
 0x4b2   : > { %v2402_v45 = vpop.eup %2401 }
 0x4b3   : > { %1820 = vst [vmem:[%s3096_s28 + $0xd8] sm:$0xff] %v1788_v15  ;;  %v1785_v48 = vmul.f32 %v2402_v45, %v3074_v55 }
 0x4b4   : > { %v2404_v36 = vpop.eup %2403 }
 0x4b5   : > { %1817 = vst [vmem:[%s3096_s28 + $0xc0] sm:$0xff] %v1785_v48  ;;  %v1786_v22 = vmul.f32 %v2404_v36, %v3077_v27 }
 0x4b6   : > { %v2406_v46 = vpop.eup %2405 }
 0x4b7   : > { %1818 = vst [vmem:[%s3096_s28 + $0xc8] sm:$0xff] %v1786_v22  ;;  %v1789_v53 = vmul.f32 %v2406_v46, %v3080_v21 }
 0x4b9   : > { %1821 = vst [vmem:[%s3096_s28 + $0xe0] sm:$0xff] %v1789_v53 }
 0x4ba   : > { %v2408_v19 = vpop.eup %2407 }
 0x4bb   : > { %v2410_v28 = vpop.eup %2409  ;;  %v1790_v23 = vmul.f32 %v2408_v19, %v3083_v59 }
 0x4bc   : > { %v1791_v55 = vmul.f32 %v2410_v28, %v3085_v30 }
 0x4bd   : > { %1822 = vst [vmem:[%s3096_s28 + $0xe8] sm:$0xff] %v1790_v23 }
 0x4be   : > { %v2412_v51 = vpop.eup %2411  ;;  %1823 = vst [vmem:[%s3096_s28 + $0xf0] sm:$0xff] %v1791_v55 }
 0x4bf   : > { %v1792_v27 = vmul.f32 %v2412_v51, %v3089_v62 }
 0x4c1   : > { %1824 = vst [vmem:[%s3096_s28 + $0xf8] sm:$0xff] %v1792_v27 }
 0x4c2   : > { %2426 = shalt.err (!%p2423_p3)
}
 0x4c3   : > { %s2427_s26 = scalar_lea.hbm %s3164_s21, 4096  ;;  %s2431_s29 = scalar_lea.hbm %s3221_s9, 8192 }
 0x4c4   : > { %p2428_p4 = scmp.ne.s32.totalorder %s3164_s21, %s2427_s26  ;;  %p2432_p9 = scmp.lt.s32.totalorder %s3164_s21, %s3221_s9 }
 0x4c5   : > { %p2433_p10 = scmp.lt.s32.totalorder %s2431_s29, %s2427_s26 }
 0x4c6   : > { %p2429_p7 = pnand %p2428_p4, %p2566_p5 }
 0x4c7   : > { %p2434_p11 = por %p2433_p10, %p2432_p9 }
 0x4c8   : > { %p2430_p8 = pneg %p2429_p7 }
 0x4ca   : > { %p2435_p12 = pnand %p2434_p11, %p2430_p8 }
 0x4cc   : > { %2438 = shalt.err (!%p2435_p12)
}
 0x4cd   : > { %s2476_s22 = smov 128   ;;  %s2477_s23 = smov 8  }
 0x4ce   : > { %2230 = dma.vmem_to_hbm [thread:$0]  (%p2566_p5), %s3166_s14, 4096, %s3164_s21, %s3172_s13, %s2476_s22, %s2476_s22, %s2477_s23  }
 0x4cf PF: > { %p2236_p13 = scmp.ge.s32.totalorder %s2473_s12, 2  ;;  %s1854_s24 = sand.u32 1, %s2461_s30  }
 0x4d0   : > { %s1855_s25 = scalar_lea.sflag [#allocation3], %s1854_s24 }
 0x4d1   : > { %p2233_p0 = pnand %p2236_p13, %p2570_p6 }
 0x4d3   : > { %p2234_p1 = pneg %p2233_p0 }
 0x4d5   : > { %2456 = dma.done.wait (%p2234_p1), %s1855_s25, 4096  }
 0x4d6   : > { %2458 = vsyncadd (%p2234_p1), %s1855_s25, 4294963200  ;;  %p19_p2 = scmp.ge.s32.totalorder %s2553_s15, 4   ;;  %s3224_s30 = smov %s2465_s10 }
 0x4d7   : > { %s3225_s10 = smov %s2469_s11  ;;  %s3226_s11 = smov %s2564_s18 }
 0x4d8   : > { %s3227_s12 = smov %s2553_s15  ;;  %21 = sbr.rel (!%p19_p2) target bundleno = 3 (0x3), region = 91 }
 0x4dd   :  { %1860 = vsyncpa [#allocation3], 1 }
 0x4de   :  { %1862 = vsyncpa [#allocation3 + $0x1], 1 }

</bundles_post_ra>
